<compile_context>
chip_gen: v6e
topology: v6e:2x2x1
jax: 0.10.0
libtpu: 0.0.40
codegen_flags: <defaults>
</compile_context>

<pallas_src>
import numpy as np
import jax
import jax.numpy as jnp
from jax.experimental import pallas as pl
from jax.experimental.pallas import tpu as pltpu


# ----------------------------------------------------------------------------
# Pallas forward (teacher forcing)
# ----------------------------------------------------------------------------
def decoder_forward(params, encoder_out, encoded_captions, caption_lengths):
    f32, bf16 = jnp.float32, jnp.bfloat16

    B = encoder_out.shape[0]
    Enc = encoder_out.shape[-1]
    enc = encoder_out.reshape(B, -1, Enc).astype(f32)          # (B, P, Enc)
    P = enc.shape[1]

    # ---- host-side bookkeeping (matches the module) --------------------------
    cap_len = caption_lengths.reshape(B).astype(jnp.int32)
    sort_ind = jnp.argsort(-cap_len)                            # descending sort
    cap_len = cap_len[sort_ind]
    enc = enc[sort_ind]
    caps = encoded_captions[sort_ind]
    decode_lengths = cap_len - 1
    T = int(jnp.max(decode_lengths))

    emb_w = params["embedding"]                                 # (V, Eemb)
    Eemb = emb_w.shape[1]
    emb_seq = jnp.transpose(jnp.take(emb_w, caps[:, :T], axis=0), (1, 0, 2))  # (T,B,Eemb)
    encT = jnp.transpose(enc, (0, 2, 1))                        # (B, Enc, P)
    dec_len_arr = decode_lengths.reshape(B, 1)

    # ---- weights: (in, out) layout, bf16 MXU operands, f32 biases ------------
    A = params["encoder_att_w"].shape[0]
    Dec = params["decoder_att_w"].shape[1]
    V = params["fc_w"].shape[0]
    D4 = 4 * Dec

    w_enc_att = params["encoder_att_w"].astype(bf16)            # (A, Enc)
    b_att_col = (params["encoder_att_b"]
                 + params["decoder_att_b"]).reshape(A, 1).astype(f32)
    w_dec_att = params["decoder_att_w"].astype(bf16)            # (A, Dec)
    w_full_col = params["full_att_w"].reshape(A, 1).astype(f32)
    b_full = params["full_att_b"].reshape(1, 1).astype(f32)
    w_fbeta = params["f_beta_w"].T.astype(bf16)                 # (Dec, Enc)
    b_fbeta = params["f_beta_b"].reshape(1, Enc).astype(f32)
    w_ih = params["lstm_w_ih"].T                                # (Eemb+Enc, 4Dec)
    w_ih_emb = w_ih[:Eemb].astype(bf16)                         # (Eemb, 4Dec)
    w_ih_awe = w_ih[Eemb:].astype(bf16)                         # (Enc, 4Dec)
    w_hh = params["lstm_w_hh"].T.astype(bf16)                   # (Dec, 4Dec)
    b_lstm = (params["lstm_b_ih"] + params["lstm_b_hh"]).reshape(1, D4).astype(f32)
    w_fc = params["fc_w"].T.astype(bf16)                        # (Dec, V)
    b_fc = params["fc_b"].reshape(1, V).astype(f32)
    w_init_h = params["init_h_w"].T.astype(bf16)                # (Enc, Dec)
    b_init_h = params["init_h_b"].reshape(1, Dec).astype(f32)
    w_init_c = params["init_c_w"].T.astype(bf16)
    b_init_c = params["init_c_b"].reshape(1, Dec).astype(f32)

    def kernel(dec_len_ref, enc_ref, encT_ref, emb_ref,
               w_enc_att_ref, b_att_col_ref, w_dec_att_ref,
               w_full_ref, b_full_ref,
               w_fbeta_ref, b_fbeta_ref,
               w_ih_emb_ref, w_ih_awe_ref, w_hh_ref, b_lstm_ref,
               w_fc_ref, b_fc_ref,
               w_init_h_ref, b_init_h_ref, w_init_c_ref, b_init_c_ref,
               pred_ref, alpha_ref,
               att1T_sc, h_sc, c_sc):
        t = pl.program_id(0)

        # --- one-time init: h0/c0 + cached loop-invariant encoder projection --
        @pl.when(t == 0)
        def _init():
            mean_rows = []
            for b in range(B):
                enc_b = enc_ref[b]                                    # (P, Enc)
                mean_rows.append(jnp.mean(enc_b, axis=0, keepdims=True))
                att1T_sc[b] = (
                    jnp.dot(w_enc_att_ref[...],
                            encT_ref[b].astype(jnp.bfloat16),
                            preferred_element_type=jnp.float32)
                    + b_att_col_ref[...])                             # (A, P)
            mean_enc = jnp.concatenate(mean_rows, axis=0).astype(jnp.bfloat16)
            h_sc[...] = (jnp.dot(mean_enc, w_init_h_ref[...],
                                 preferred_element_type=jnp.float32)
                         + b_init_h_ref[...])
            c_sc[...] = (jnp.dot(mean_enc, w_init_c_ref[...],
                                 preferred_element_type=jnp.float32)
                         + b_init_c_ref[...])

        h = h_sc[...]                                                  # (B, Dec)
        c = c_sc[...]
        h_bf = h.astype(jnp.bfloat16)

        # --- attention: decoder-side projection, batched over B ---------------
        # att2T[a, b] = (decoder_att @ h[b])[a]  (both biases folded into att1T)
        att2T = jax.lax.dot_general(
            w_dec_att_ref[...], h_bf,
            dimension_numbers=(((1,), (1,)), ((), ())),
            preferred_element_type=jnp.float32)                        # (A, B)

        alpha_rows, awe_rows = [], []
        for b in range(B):
            e_b = jnp.maximum(att1T_sc[b] + att2T[:, b:b + 1], 0.0)    # (A, P)
            score = (jnp.sum(e_b * w_full_ref[...], axis=0, keepdims=True)
                     + b_full_ref[...])                                # (1, P)
            m = jnp.max(score, axis=1, keepdims=True)
            p_un = jnp.exp(score - m)
            alpha_b = p_un / jnp.sum(p_un, axis=1, keepdims=True)      # (1, P)
            awe_b = jnp.dot(alpha_b, enc_ref[b],
                            preferred_element_type=jnp.float32)        # (1, Enc)
            alpha_rows.append(alpha_b)
            awe_rows.append(awe_b)
        alpha = jnp.concatenate(alpha_rows, axis=0)                    # (B, P)
        awe = jnp.concatenate(awe_rows, axis=0)                        # (B, Enc)

        # --- gating + LSTM cell (batched over B) -------------------------------
        gate = jax.nn.sigmoid(
            jnp.dot(h_bf, w_fbeta_ref[...],
                    preferred_element_type=jnp.float32) + b_fbeta_ref[...])
        awe = gate * awe

        emb_t = emb_ref[0]                                             # (B, Eemb)
        gates = (jnp.dot(emb_t.astype(jnp.bfloat16), w_ih_emb_ref[...],
                         preferred_element_type=jnp.float32)
                 + jnp.dot(awe.astype(jnp.bfloat16), w_ih_awe_ref[...],
                           preferred_element_type=jnp.float32)
                 + jnp.dot(h_bf, w_hh_ref[...],
                           preferred_element_type=jnp.float32)
                 + b_lstm_ref[...])                                    # (B, 4*Dec)
        i_g = jax.nn.sigmoid(gates[:, 0:Dec])
        f_g = jax.nn.sigmoid(gates[:, Dec:2 * Dec])
        g_g = jnp.tanh(gates[:, 2 * Dec:3 * Dec])
        o_g = jax.nn.sigmoid(gates[:, 3 * Dec:4 * Dec])
        c_new = f_g * c + i_g * g_g
        h_new = o_g * jnp.tanh(c_new)
        h_sc[...] = h_new
        c_sc[...] = c_new

        # --- output head + per-row caption-length masking ----------------------
        # TODO(synk): dropout treated as identity (inference semantics).
        preds = (jnp.dot(h_new.astype(jnp.bfloat16), w_fc_ref[...],
                         preferred_element_type=jnp.float32) + b_fc_ref[...])
        valid = dec_len_ref[...] > t                                   # (B, 1)
        pred_ref[0] = jnp.where(valid, preds, 0.0)
        alpha_ref[0] = jnp.where(valid, alpha, 0.0)

    const2 = lambda t: (0, 0)
    const3 = lambda t: (0, 0, 0)
    step3 = lambda t: (t, 0, 0)

    preds_tbv, alphas_tbp = pl.pallas_call(
        kernel,
        out_shape=(jax.ShapeDtypeStruct((T, B, V), f32),
                   jax.ShapeDtypeStruct((T, B, P), f32)),
        grid=(T,),
        in_specs=[
            pl.BlockSpec((B, 1), const2),            # decode lengths (int32)
            pl.BlockSpec((B, P, Enc), const3),       # encoder_out
            pl.BlockSpec((B, Enc, P), const3),       # encoder_out, transposed
            pl.BlockSpec((1, B, Eemb), step3),       # embeddings for step t
            pl.BlockSpec((A, Enc), const2),          # encoder_att.weight
            pl.BlockSpec((A, 1), const2),            # enc_att.b + dec_att.b
            pl.BlockSpec((A, Dec), const2),          # decoder_att.weight
            pl.BlockSpec((A, 1), const2),            # full_att.weight
            pl.BlockSpec((1, 1), const2),            # full_att.bias
            pl.BlockSpec((Dec, Enc), const2),        # f_beta.weight.T
            pl.BlockSpec((1, Enc), const2),          # f_beta.bias
            pl.BlockSpec((Eemb, D4), const2),        # LSTM w_ih (embed part)
            pl.BlockSpec((Enc, D4), const2),         # LSTM w_ih (attention part)
            pl.BlockSpec((Dec, D4), const2),         # LSTM w_hh.T
            pl.BlockSpec((1, D4), const2),           # LSTM b_ih + b_hh
            pl.BlockSpec((Dec, V), const2),          # fc.weight.T
            pl.BlockSpec((1, V), const2),            # fc.bias
            pl.BlockSpec((Enc, Dec), const2),        # init_h.weight.T
            pl.BlockSpec((1, Dec), const2),          # init_h.bias
            pl.BlockSpec((Enc, Dec), const2),        # init_c.weight.T
            pl.BlockSpec((1, Dec), const2),          # init_c.bias
        ],
        out_specs=(pl.BlockSpec((1, B, V), step3),
                   pl.BlockSpec((1, B, P), step3)),
        scratch_shapes=[
            pltpu.VMEM((B, A, P), f32),    # cached encoder_att(enc) (transposed)
            pltpu.VMEM((B, Dec), f32),     # h state
            pltpu.VMEM((B, Dec), f32),     # c state
        ],
        compiler_params=pltpu.CompilerParams(
            dimension_semantics=("arbitrary",)),
    )(dec_len_arr, enc, encT, emb_seq,
      w_enc_att, b_att_col, w_dec_att, w_full_col, b_full,
      w_fbeta, b_fbeta, w_ih_emb, w_ih_awe, w_hh, b_lstm,
      w_fc, b_fc, w_init_h, b_init_h, w_init_c, b_init_c)

    predictions = jnp.transpose(preds_tbv, (1, 0, 2))            # (B, T, V)
    alphas = jnp.transpose(alphas_tbp, (1, 0, 2))                # (B, T, P)
    return predictions, caps, decode_lengths, alphas, sort_ind


# ----------------------------------------------------------------------------
# Pure-JAX reference (same math, same bf16-matmul / f32-accumulate precision)
# ----------------------------------------------------------------------------
def decoder_reference(params, encoder_out, encoded_captions, caption_lengths):
    f32, bf16 = jnp.float32, jnp.bfloat16
    B = encoder_out.shape[0]
    Enc = encoder_out.shape[-1]
    enc = encoder_out.reshape(B, -1, Enc).astype(f32)
    P = enc.shape[1]
    V = params["fc_w"].shape[0]
    Dec = params["decoder_att_w"].shape[1]

    cap_len = caption_lengths.reshape(B).astype(jnp.int32)
    sort_ind = jnp.argsort(-cap_len)
    cap_len = cap_len[sort_ind]
    enc = enc[sort_ind]
    caps = encoded_captions[sort_ind]
    dec_len = cap_len - 1
    T = int(jnp.max(dec_len))
    emb_seq = jnp.take(params["embedding"], caps[:, :T], axis=0)   # (B, T, Eemb)

    def lin(x, w, b):
        return (jnp.dot(x.astype(bf16), w.T.astype(bf16),
                        preferred_element_type=f32) + b)

    mean_enc = enc.mean(axis=1)
    h = lin(mean_enc, params["init_h_w"], params["init_h_b"])
    c = lin(mean_enc, params["init_c_w"], params["init_c_b"])

    att1 = (jnp.einsum("bpe,ae->bpa", enc.astype(bf16),
                       params["encoder_att_w"].astype(bf16),
                       preferred_element_type=f32)
            + params["encoder_att_b"])

    preds_out = np.zeros((B, T, V), np.float32)
    alphas_out = np.zeros((B, T, P), np.float32)
    for t in range(T):
        att2 = lin(h, params["decoder_att_w"], params["decoder_att_b"])
        e = jnp.maximum(att1 + att2[:, None, :], 0.0)
        score = (jnp.einsum("bpa,a->bp", e, params["full_att_w"].reshape(-1))
                 + params["full_att_b"])
        alpha = jax.nn.softmax(score, axis=1)
        awe = jnp.einsum("bp,bpe->be", alpha, enc)
        gate = jax.nn.sigmoid(lin(h, params["f_beta_w"], params["f_beta_b"]))
        awe = gate * awe
        x = jnp.concatenate([emb_seq[:, t, :], awe], axis=1)
        gates = (jnp.dot(x.astype(bf16), params["lstm_w_ih"].T.astype(bf16),
                         preferred_element_type=f32)
                 + jnp.dot(h.astype(bf16), params["lstm_w_hh"].T.astype(bf16),
                           preferred_element_type=f32)
                 + params["lstm_b_ih"] + params["lstm_b_hh"])
        i_g = jax.nn.sigmoid(gates[:, 0:Dec])
        f_g = jax.nn.sigmoid(gates[:, Dec:2 * Dec])
        g_g = jnp.tanh(gates[:, 2 * Dec:3 * Dec])
        o_g = jax.nn.sigmoid(gates[:, 3 * Dec:4 * Dec])
        c = f_g * c + i_g * g_g
        h = o_g * jnp.tanh(c)
        preds = lin(h, params["fc_w"], params["fc_b"])     # dropout == identity
        mask = (dec_len > t)[:, None].astype(f32)
        preds_out[:, t, :] = np.asarray(preds * mask)
        alphas_out[:, t, :] = np.asarray(alpha * mask)
    return preds_out, caps, dec_len, alphas_out, sort_ind


# ----------------------------------------------------------------------------
# Main
# ----------------------------------------------------------------------------
if __name__ == "__main__":
    # Small, module-consistent shapes:
    #   encoder_out: (batch=2, 4, 4, encoder_dim=32)   (real: 14x14x2048)
    #   attention_dim=32, embed_dim=32, decoder_dim=32, vocab=48, captions len 8
    B, S, Enc = 2, 4, 32
    A, Eemb, Dec, V, L = 32, 32, 32, 48, 8

    key = jax.random.PRNGKey(0)
    ks = jax.random.split(key, 24)

    def u(k, shape, scale):
        return jax.random.uniform(k, shape, jnp.float32, -scale, scale)

    params = {
        "embedding":     u(ks[0], (V, Eemb), 0.1),
        "encoder_att_w": u(ks[1], (A, Enc), 0.15),
        "encoder_att_b": u(ks[2], (A,), 0.1),
        "decoder_att_w": u(ks[3], (A, Dec), 0.15),
        "decoder_att_b": u(ks[4], (A,), 0.1),
        "full_att_w":    u(ks[5], (1, A), 0.15),
        "full_att_b":    u(ks[6], (1,), 0.1),
        "f_beta_w":      u(ks[7], (Enc, Dec), 0.15),
        "f_beta_b":      u(ks[8], (Enc,), 0.1),
        "lstm_w_ih":     u(ks[9], (4 * Dec, Eemb + Enc), 0.1),
        "lstm_w_hh":     u(ks[10], (4 * Dec, Dec), 0.1),
        "lstm_b_ih":     u(ks[11], (4 * Dec,), 0.1),
        "lstm_b_hh":     u(ks[12], (4 * Dec,), 0.1),
        "fc_w":          u(ks[13], (V, Dec), 0.1),
        "fc_b":          jnp.zeros((V,), jnp.float32),
        "init_h_w":      u(ks[14], (Dec, Enc), 0.15),
        "init_h_b":      u(ks[15], (Dec,), 0.1),
        "init_c_w":      u(ks[16], (Dec, Enc), 0.15),
        "init_c_b":      u(ks[17], (Dec,), 0.1),
    }

    encoder_out = jax.random.normal(ks[18], (B, S, S, Enc), jnp.float32)
    encoded_captions = jax.random.randint(ks[19], (B, L), 0, V)
    caption_lengths = jnp.array([[6], [8]], dtype=jnp.int32)

    preds, caps_s, dec_len, alphas, sort_ind = decoder_forward(
        params, encoder_out, encoded_captions, caption_lengths)
    preds = jax.block_until_ready(preds)
    alphas = jax.block_until_ready(alphas)

    rp, rc, rd, ra, rs = decoder_reference(
        params, encoder_out, encoded_captions, caption_lengths)

    T = int(np.max(np.asarray(caption_lengths))) - 1
    assert preds.shape == (B, T, V), preds.shape
    assert alphas.shape == (B, T, S * S), alphas.shape
    assert np.array_equal(np.asarray(sort_ind), np.asarray(rs))
    assert np.allclose(np.asarray(preds), rp, rtol=2e-2, atol=2e-2)
    assert np.allclose(np.asarray(alphas), ra, rtol=2e-2, atol=2e-2)

    print("KERNEL_OK")
</pallas_src>

<mosaic_0001>
module attributes {stable_mosaic.version = 11 : i64} {
  func.func @kernel(%arg0: i32, %arg1: memref<2x1xi32, #tpu.memory_space<vmem>>, %arg2: memref<2x16x32xf32, #tpu.memory_space<vmem>>, %arg3: memref<2x32x16xf32, #tpu.memory_space<vmem>>, %arg4: memref<1x2x32xf32, #tpu.memory_space<vmem>>, %arg5: memref<32x32xbf16, #tpu.memory_space<vmem>>, %arg6: memref<32x1xf32, #tpu.memory_space<vmem>>, %arg7: memref<32x32xbf16, #tpu.memory_space<vmem>>, %arg8: memref<32x1xf32, #tpu.memory_space<vmem>>, %arg9: memref<1x1xf32, #tpu.memory_space<vmem>>, %arg10: memref<32x32xbf16, #tpu.memory_space<vmem>>, %arg11: memref<1x32xf32, #tpu.memory_space<vmem>>, %arg12: memref<32x128xbf16, #tpu.memory_space<vmem>>, %arg13: memref<32x128xbf16, #tpu.memory_space<vmem>>, %arg14: memref<32x128xbf16, #tpu.memory_space<vmem>>, %arg15: memref<1x128xf32, #tpu.memory_space<vmem>>, %arg16: memref<32x48xbf16, #tpu.memory_space<vmem>>, %arg17: memref<1x48xf32, #tpu.memory_space<vmem>>, %arg18: memref<32x32xbf16, #tpu.memory_space<vmem>>, %arg19: memref<1x32xf32, #tpu.memory_space<vmem>>, %arg20: memref<32x32xbf16, #tpu.memory_space<vmem>>, %arg21: memref<1x32xf32, #tpu.memory_space<vmem>>, %arg22: memref<1x2x48xf32, #tpu.memory_space<vmem>>, %arg23: memref<1x2x16xf32, #tpu.memory_space<vmem>>, %arg24: memref<2x32x16xf32, #tpu.memory_space<vmem>>, %arg25: memref<2x32xf32, #tpu.memory_space<vmem>>, %arg26: memref<2x32xf32, #tpu.memory_space<vmem>>) attributes {dimension_semantics = [#tpu.dimension_semantics<arbitrary>], iteration_bounds = array<i64: 7>, scalar_prefetch = 0 : i64, scratch_operands = 3 : i64, tpu.core_type = #tpu.core_type<tc>, window_params = [{pipeline_mode = #tpu.pipeline_mode<synchronous>, transform_indices = @transform_0, window_bounds = array<i64: 2, 1>}, {pipeline_mode = #tpu.pipeline_mode<synchronous>, transform_indices = @transform_1, window_bounds = array<i64: 2, 16, 32>}, {pipeline_mode = #tpu.pipeline_mode<synchronous>, transform_indices = @transform_2, window_bounds = array<i64: 2, 32, 16>}, {transform_indices = @transform_3, window_bounds = array<i64: 1, 2, 32>}, {pipeline_mode = #tpu.pipeline_mode<synchronous>, transform_indices = @transform_4, window_bounds = array<i64: 32, 32>}, {pipeline_mode = #tpu.pipeline_mode<synchronous>, transform_indices = @transform_5, window_bounds = array<i64: 32, 1>}, {pipeline_mode = #tpu.pipeline_mode<synchronous>, transform_indices = @transform_6, window_bounds = array<i64: 32, 32>}, {pipeline_mode = #tpu.pipeline_mode<synchronous>, transform_indices = @transform_7, window_bounds = array<i64: 32, 1>}, {pipeline_mode = #tpu.pipeline_mode<synchronous>, transform_indices = @transform_8, window_bounds = array<i64: 1, 1>}, {pipeline_mode = #tpu.pipeline_mode<synchronous>, transform_indices = @transform_9, window_bounds = array<i64: 32, 32>}, {pipeline_mode = #tpu.pipeline_mode<synchronous>, transform_indices = @transform_10, window_bounds = array<i64: 1, 32>}, {pipeline_mode = #tpu.pipeline_mode<synchronous>, transform_indices = @transform_11, window_bounds = array<i64: 32, 128>}, {pipeline_mode = #tpu.pipeline_mode<synchronous>, transform_indices = @transform_12, window_bounds = array<i64: 32, 128>}, {pipeline_mode = #tpu.pipeline_mode<synchronous>, transform_indices = @transform_13, window_bounds = array<i64: 32, 128>}, {pipeline_mode = #tpu.pipeline_mode<synchronous>, transform_indices = @transform_14, window_bounds = array<i64: 1, 128>}, {pipeline_mode = #tpu.pipeline_mode<synchronous>, transform_indices = @transform_15, window_bounds = array<i64: 32, 48>}, {pipeline_mode = #tpu.pipeline_mode<synchronous>, transform_indices = @transform_16, window_bounds = array<i64: 1, 48>}, {pipeline_mode = #tpu.pipeline_mode<synchronous>, transform_indices = @transform_17, window_bounds = array<i64: 32, 32>}, {pipeline_mode = #tpu.pipeline_mode<synchronous>, transform_indices = @transform_18, window_bounds = array<i64: 1, 32>}, {pipeline_mode = #tpu.pipeline_mode<synchronous>, transform_indices = @transform_19, window_bounds = array<i64: 32, 32>}, {pipeline_mode = #tpu.pipeline_mode<synchronous>, transform_indices = @transform_20, window_bounds = array<i64: 1, 32>}, {transform_indices = @transform_21, window_bounds = array<i64: 1, 2, 48>}, {transform_indices = @transform_22, window_bounds = array<i64: 1, 2, 16>}]} {
    %c0_i32 = arith.constant 0 : i32
    %0 = arith.cmpi eq, %arg0, %c0_i32 : i32
    %1 = arith.extui %0 : i1 to i32
    %c0_i32_0 = arith.constant 0 : i32
    %2 = arith.cmpi ne, %1, %c0_i32_0 : i32
    scf.if %2 {
      %c0_77 = arith.constant 0 : index
      %c0_78 = arith.constant 0 : index
      %c0_79 = arith.constant 0 : index
      %140 = vector.load %arg2[%c0_77, %c0_78, %c0_79] : memref<2x16x32xf32, #tpu.memory_space<vmem>>, vector<1x16x32xf32>
      %141 = vector.shape_cast %140 : vector<1x16x32xf32> to vector<16x32xf32>
      %cst_80 = arith.constant dense<0.000000e+00> : vector<32xf32>
      %142 = vector.multi_reduction <add>, %141, %cst_80 [0] : vector<16x32xf32> to vector<32xf32>
      %143 = vector.shape_cast %142 : vector<32xf32> to vector<1x32xf32>
      %cst_81 = arith.constant 1.600000e+01 : f32
      %144 = vector.broadcast %cst_81 : f32 to vector<1x32xf32>
      %145 = arith.divf %143, %144 : vector<1x32xf32>
      %c0_82 = arith.constant 0 : index
      %c0_83 = arith.constant 0 : index
      %146 = vector.load %arg5[%c0_82, %c0_83] : memref<32x32xbf16, #tpu.memory_space<vmem>>, vector<32x32xbf16>
      %c0_84 = arith.constant 0 : index
      %c0_85 = arith.constant 0 : index
      %c0_86 = arith.constant 0 : index
      %147 = vector.load %arg3[%c0_84, %c0_85, %c0_86] : memref<2x32x16xf32, #tpu.memory_space<vmem>>, vector<1x32x16xf32>
      %148 = vector.shape_cast %147 : vector<1x32x16xf32> to vector<32x16xf32>
      %149 = arith.truncf %148 : vector<32x16xf32> to vector<32x16xbf16>
      %cst_87 = arith.constant dense<0.000000e+00> : vector<32x16xf32>
      %150 = tpu.matmul %146, %149, %cst_87 {dimension_numbers = #tpu.dot_dimension_numbers<[1], [0], [0], [1], [0, 0, 1, 1], [], []>} : vector<32x32xbf16>, vector<32x16xbf16>, vector<32x16xf32> -> vector<32x16xf32>
      %c0_88 = arith.constant 0 : index
      %c0_89 = arith.constant 0 : index
      %151 = vector.load %arg6[%c0_88, %c0_89] : memref<32x1xf32, #tpu.memory_space<vmem>>, vector<32x1xf32>
      %152 = vector.broadcast %151 : vector<32x1xf32> to vector<32x16xf32>
      %153 = arith.addf %150, %152 : vector<32x16xf32>
      %c0_90 = arith.constant 0 : index
      %c0_91 = arith.constant 0 : index
      %c0_92 = arith.constant 0 : index
      %154 = vector.load %arg24[%c0_90, %c0_91, %c0_92] : memref<2x32x16xf32, #tpu.memory_space<vmem>>, vector<1x32x16xf32>
      %155 = vector.shape_cast %154 : vector<1x32x16xf32> to vector<32x16xf32>
      %156 = vector.shape_cast %153 : vector<32x16xf32> to vector<1x32x16xf32>
      tpu.vector_store %arg24[%c0_90, %c0_91, %c0_92], %156 {strides = array<i32>} : memref<2x32x16xf32, #tpu.memory_space<vmem>>, vector<1x32x16xf32>,
      %c1_93 = arith.constant 1 : index
      %c0_94 = arith.constant 0 : index
      %c0_95 = arith.constant 0 : index
      %157 = vector.load %arg2[%c1_93, %c0_94, %c0_95] : memref<2x16x32xf32, #tpu.memory_space<vmem>>, vector<1x16x32xf32>
      %158 = vector.shape_cast %157 : vector<1x16x32xf32> to vector<16x32xf32>
      %cst_96 = arith.constant dense<0.000000e+00> : vector<32xf32>
      %159 = vector.multi_reduction <add>, %158, %cst_96 [0] : vector<16x32xf32> to vector<32xf32>
      %160 = vector.shape_cast %159 : vector<32xf32> to vector<1x32xf32>
      %cst_97 = arith.constant 1.600000e+01 : f32
      %161 = vector.broadcast %cst_97 : f32 to vector<1x32xf32>
      %162 = arith.divf %160, %161 : vector<1x32xf32>
      %c0_98 = arith.constant 0 : index
      %c0_99 = arith.constant 0 : index
      %163 = vector.load %arg5[%c0_98, %c0_99] : memref<32x32xbf16, #tpu.memory_space<vmem>>, vector<32x32xbf16>
      %c1_100 = arith.constant 1 : index
      %c0_101 = arith.constant 0 : index
      %c0_102 = arith.constant 0 : index
      %164 = vector.load %arg3[%c1_100, %c0_101, %c0_102] : memref<2x32x16xf32, #tpu.memory_space<vmem>>, vector<1x32x16xf32>
      %165 = vector.shape_cast %164 : vector<1x32x16xf32> to vector<32x16xf32>
      %166 = arith.truncf %165 : vector<32x16xf32> to vector<32x16xbf16>
      %cst_103 = arith.constant dense<0.000000e+00> : vector<32x16xf32>
      %167 = tpu.matmul %163, %166, %cst_103 {dimension_numbers = #tpu.dot_dimension_numbers<[1], [0], [0], [1], [0, 0, 1, 1], [], []>} : vector<32x32xbf16>, vector<32x16xbf16>, vector<32x16xf32> -> vector<32x16xf32>
      %c0_104 = arith.constant 0 : index
      %c0_105 = arith.constant 0 : index
      %168 = vector.load %arg6[%c0_104, %c0_105] : memref<32x1xf32, #tpu.memory_space<vmem>>, vector<32x1xf32>
      %169 = vector.broadcast %168 : vector<32x1xf32> to vector<32x16xf32>
      %170 = arith.addf %167, %169 : vector<32x16xf32>
      %c1_106 = arith.constant 1 : index
      %c0_107 = arith.constant 0 : index
      %c0_108 = arith.constant 0 : index
      %171 = vector.load %arg24[%c1_106, %c0_107, %c0_108] : memref<2x32x16xf32, #tpu.memory_space<vmem>>, vector<1x32x16xf32>
      %172 = vector.shape_cast %171 : vector<1x32x16xf32> to vector<32x16xf32>
      %173 = vector.shape_cast %170 : vector<32x16xf32> to vector<1x32x16xf32>
      tpu.vector_store %arg24[%c1_106, %c0_107, %c0_108], %173 {strides = array<i32>} : memref<2x32x16xf32, #tpu.memory_space<vmem>>, vector<1x32x16xf32>,
      %174 = tpu.concatenate %145, %162 in 0 : vector<1x32xf32>, vector<1x32xf32> -> vector<2x32xf32>
      %175 = arith.truncf %174 : vector<2x32xf32> to vector<2x32xbf16>
      %c0_109 = arith.constant 0 : index
      %c0_110 = arith.constant 0 : index
      %176 = vector.load %arg18[%c0_109, %c0_110] : memref<32x32xbf16, #tpu.memory_space<vmem>>, vector<32x32xbf16>
      %cst_111 = arith.constant dense<0.000000e+00> : vector<2x32xf32>
      %177 = tpu.matmul %175, %176, %cst_111 {dimension_numbers = #tpu.dot_dimension_numbers<[1], [0], [0], [1], [0, 0, 1, 1], [], []>} : vector<2x32xbf16>, vector<32x32xbf16>, vector<2x32xf32> -> vector<2x32xf32>
      %c0_112 = arith.constant 0 : index
      %c0_113 = arith.constant 0 : index
      %178 = vector.load %arg19[%c0_112, %c0_113] : memref<1x32xf32, #tpu.memory_space<vmem>>, vector<1x32xf32>
      %179 = vector.broadcast %178 : vector<1x32xf32> to vector<2x32xf32>
      %180 = arith.addf %177, %179 : vector<2x32xf32>
      %c0_114 = arith.constant 0 : index
      %c0_115 = arith.constant 0 : index
      %181 = vector.load %arg25[%c0_114, %c0_115] : memref<2x32xf32, #tpu.memory_space<vmem>>, vector<2x32xf32>
      tpu.vector_store %arg25[%c0_114, %c0_115], %180 {strides = array<i32>} : memref<2x32xf32, #tpu.memory_space<vmem>>, vector<2x32xf32>,
      %c0_116 = arith.constant 0 : index
      %c0_117 = arith.constant 0 : index
      %182 = vector.load %arg20[%c0_116, %c0_117] : memref<32x32xbf16, #tpu.memory_space<vmem>>, vector<32x32xbf16>
      %cst_118 = arith.constant dense<0.000000e+00> : vector<2x32xf32>
      %183 = tpu.matmul %175, %182, %cst_118 {dimension_numbers = #tpu.dot_dimension_numbers<[1], [0], [0], [1], [0, 0, 1, 1], [], []>} : vector<2x32xbf16>, vector<32x32xbf16>, vector<2x32xf32> -> vector<2x32xf32>
      %c0_119 = arith.constant 0 : index
      %c0_120 = arith.constant 0 : index
      %184 = vector.load %arg21[%c0_119, %c0_120] : memref<1x32xf32, #tpu.memory_space<vmem>>, vector<1x32xf32>
      %185 = vector.broadcast %184 : vector<1x32xf32> to vector<2x32xf32>
      %186 = arith.addf %183, %185 : vector<2x32xf32>
      %c0_121 = arith.constant 0 : index
      %c0_122 = arith.constant 0 : index
      %187 = vector.load %arg26[%c0_121, %c0_122] : memref<2x32xf32, #tpu.memory_space<vmem>>, vector<2x32xf32>
      tpu.vector_store %arg26[%c0_121, %c0_122], %186 {strides = array<i32>} : memref<2x32xf32, #tpu.memory_space<vmem>>, vector<2x32xf32>,
    } else {
    }
    %c0 = arith.constant 0 : index
    %c0_1 = arith.constant 0 : index
    %3 = vector.load %arg25[%c0, %c0_1] : memref<2x32xf32, #tpu.memory_space<vmem>>, vector<2x32xf32>
    %c0_2 = arith.constant 0 : index
    %c0_3 = arith.constant 0 : index
    %4 = vector.load %arg26[%c0_2, %c0_3] : memref<2x32xf32, #tpu.memory_space<vmem>>, vector<2x32xf32>
    %5 = arith.truncf %3 : vector<2x32xf32> to vector<2x32xbf16>
    %c0_4 = arith.constant 0 : index
    %c0_5 = arith.constant 0 : index
    %6 = vector.load %arg7[%c0_4, %c0_5] : memref<32x32xbf16, #tpu.memory_space<vmem>>, vector<32x32xbf16>
    %cst = arith.constant dense<0.000000e+00> : vector<32x2xf32>
    %7 = tpu.matmul %6, %5, %cst {dimension_numbers = #tpu.dot_dimension_numbers<[1], [1], [0], [0], [0, 0, 1, 0], [], []>} : vector<32x32xbf16>, vector<2x32xbf16>, vector<32x2xf32> -> vector<32x2xf32>
    %c0_6 = arith.constant 0 : index
    %c0_7 = arith.constant 0 : index
    %c0_8 = arith.constant 0 : index
    %8 = vector.load %arg24[%c0_6, %c0_7, %c0_8] : memref<2x32x16xf32, #tpu.memory_space<vmem>>, vector<1x32x16xf32>
    %9 = vector.shape_cast %8 : vector<1x32x16xf32> to vector<32x16xf32>
    %10 = vector.extract_strided_slice %7 {offsets = [0, 0], sizes = [32, 1], strides = [1, 1]} : vector<32x2xf32> to vector<32x1xf32>
    %11 = vector.broadcast %10 : vector<32x1xf32> to vector<32x16xf32>
    %12 = arith.addf %9, %11 : vector<32x16xf32>
    %cst_9 = arith.constant 0.000000e+00 : f32
    %13 = vector.broadcast %cst_9 : f32 to vector<32x16xf32>
    %14 = arith.maximumf %12, %13 : vector<32x16xf32>
    %c0_10 = arith.constant 0 : index
    %c0_11 = arith.constant 0 : index
    %15 = vector.load %arg8[%c0_10, %c0_11] : memref<32x1xf32, #tpu.memory_space<vmem>>, vector<32x1xf32>
    %16 = vector.broadcast %15 : vector<32x1xf32> to vector<32x16xf32>
    %17 = arith.mulf %14, %16 : vector<32x16xf32>
    %cst_12 = arith.constant dense<0.000000e+00> : vector<16xf32>
    %18 = vector.multi_reduction <add>, %17, %cst_12 [0] : vector<32x16xf32> to vector<16xf32>
    %19 = vector.shape_cast %18 : vector<16xf32> to vector<1x16xf32>
    %c0_13 = arith.constant 0 : index
    %c0_14 = arith.constant 0 : index
    %20 = vector.load %arg9[%c0_13, %c0_14] : memref<1x1xf32, #tpu.memory_space<vmem>>, vector<1x1xf32>
    %21 = vector.broadcast %20 : vector<1x1xf32> to vector<1x16xf32>
    %22 = arith.addf %19, %21 : vector<1x16xf32>
    %cst_15 = arith.constant dense<0xFF800000> : vector<1xf32>
    %23 = vector.multi_reduction <maximumf>, %22, %cst_15 [1] : vector<1x16xf32> to vector<1xf32>
    %24 = vector.shape_cast %23 : vector<1xf32> to vector<1x1xf32>
    %25 = vector.broadcast %24 : vector<1x1xf32> to vector<1x16xf32>
    %26 = arith.subf %22, %25 : vector<1x16xf32>
    %27 = math.exp %26 : vector<1x16xf32>
    %cst_16 = arith.constant dense<0.000000e+00> : vector<1xf32>
    %28 = vector.multi_reduction <add>, %27, %cst_16 [1] : vector<1x16xf32> to vector<1xf32>
    %29 = vector.shape_cast %28 : vector<1xf32> to vector<1x1xf32>
    %30 = vector.broadcast %29 : vector<1x1xf32> to vector<1x16xf32>
    %31 = arith.divf %27, %30 : vector<1x16xf32>
    %c0_17 = arith.constant 0 : index
    %c0_18 = arith.constant 0 : index
    %c0_19 = arith.constant 0 : index
    %32 = vector.load %arg2[%c0_17, %c0_18, %c0_19] : memref<2x16x32xf32, #tpu.memory_space<vmem>>, vector<1x16x32xf32>
    %33 = vector.shape_cast %32 : vector<1x16x32xf32> to vector<16x32xf32>
    %cst_20 = arith.constant dense<0.000000e+00> : vector<1x32xf32>
    %34 = tpu.matmul %31, %33, %cst_20 {dimension_numbers = #tpu.dot_dimension_numbers<[1], [0], [0], [1], [0, 0, 1, 1], [], []>} : vector<1x16xf32>, vector<16x32xf32>, vector<1x32xf32> -> vector<1x32xf32>
    %c1 = arith.constant 1 : index
    %c0_21 = arith.constant 0 : index
    %c0_22 = arith.constant 0 : index
    %35 = vector.load %arg24[%c1, %c0_21, %c0_22] : memref<2x32x16xf32, #tpu.memory_space<vmem>>, vector<1x32x16xf32>
    %36 = vector.shape_cast %35 : vector<1x32x16xf32> to vector<32x16xf32>
    %37 = vector.extract_strided_slice %7 {offsets = [0, 1], sizes = [32, 1], strides = [1, 1]} : vector<32x2xf32> to vector<32x1xf32>
    %38 = vector.broadcast %37 : vector<32x1xf32> to vector<32x16xf32>
    %39 = arith.addf %36, %38 : vector<32x16xf32>
    %cst_23 = arith.constant 0.000000e+00 : f32
    %40 = vector.broadcast %cst_23 : f32 to vector<32x16xf32>
    %41 = arith.maximumf %39, %40 : vector<32x16xf32>
    %c0_24 = arith.constant 0 : index
    %c0_25 = arith.constant 0 : index
    %42 = vector.load %arg8[%c0_24, %c0_25] : memref<32x1xf32, #tpu.memory_space<vmem>>, vector<32x1xf32>
    %43 = vector.broadcast %42 : vector<32x1xf32> to vector<32x16xf32>
    %44 = arith.mulf %41, %43 : vector<32x16xf32>
    %cst_26 = arith.constant dense<0.000000e+00> : vector<16xf32>
    %45 = vector.multi_reduction <add>, %44, %cst_26 [0] : vector<32x16xf32> to vector<16xf32>
    %46 = vector.shape_cast %45 : vector<16xf32> to vector<1x16xf32>
    %c0_27 = arith.constant 0 : index
    %c0_28 = arith.constant 0 : index
    %47 = vector.load %arg9[%c0_27, %c0_28] : memref<1x1xf32, #tpu.memory_space<vmem>>, vector<1x1xf32>
    %48 = vector.broadcast %47 : vector<1x1xf32> to vector<1x16xf32>
    %49 = arith.addf %46, %48 : vector<1x16xf32>
    %cst_29 = arith.constant dense<0xFF800000> : vector<1xf32>
    %50 = vector.multi_reduction <maximumf>, %49, %cst_29 [1] : vector<1x16xf32> to vector<1xf32>
    %51 = vector.shape_cast %50 : vector<1xf32> to vector<1x1xf32>
    %52 = vector.broadcast %51 : vector<1x1xf32> to vector<1x16xf32>
    %53 = arith.subf %49, %52 : vector<1x16xf32>
    %54 = math.exp %53 : vector<1x16xf32>
    %cst_30 = arith.constant dense<0.000000e+00> : vector<1xf32>
    %55 = vector.multi_reduction <add>, %54, %cst_30 [1] : vector<1x16xf32> to vector<1xf32>
    %56 = vector.shape_cast %55 : vector<1xf32> to vector<1x1xf32>
    %57 = vector.broadcast %56 : vector<1x1xf32> to vector<1x16xf32>
    %58 = arith.divf %54, %57 : vector<1x16xf32>
    %c1_31 = arith.constant 1 : index
    %c0_32 = arith.constant 0 : index
    %c0_33 = arith.constant 0 : index
    %59 = vector.load %arg2[%c1_31, %c0_32, %c0_33] : memref<2x16x32xf32, #tpu.memory_space<vmem>>, vector<1x16x32xf32>
    %60 = vector.shape_cast %59 : vector<1x16x32xf32> to vector<16x32xf32>
    %cst_34 = arith.constant dense<0.000000e+00> : vector<1x32xf32>
    %61 = tpu.matmul %58, %60, %cst_34 {dimension_numbers = #tpu.dot_dimension_numbers<[1], [0], [0], [1], [0, 0, 1, 1], [], []>} : vector<1x16xf32>, vector<16x32xf32>, vector<1x32xf32> -> vector<1x32xf32>
    %62 = tpu.concatenate %31, %58 in 0 : vector<1x16xf32>, vector<1x16xf32> -> vector<2x16xf32>
    %63 = tpu.concatenate %34, %61 in 0 : vector<1x32xf32>, vector<1x32xf32> -> vector<2x32xf32>
    %c0_35 = arith.constant 0 : index
    %c0_36 = arith.constant 0 : index
    %64 = vector.load %arg10[%c0_35, %c0_36] : memref<32x32xbf16, #tpu.memory_space<vmem>>, vector<32x32xbf16>
    %cst_37 = arith.constant dense<0.000000e+00> : vector<2x32xf32>
    %65 = tpu.matmul %5, %64, %cst_37 {dimension_numbers = #tpu.dot_dimension_numbers<[1], [0], [0], [1], [0, 0, 1, 1], [], []>} : vector<2x32xbf16>, vector<32x32xbf16>, vector<2x32xf32> -> vector<2x32xf32>
    %c0_38 = arith.constant 0 : index
    %c0_39 = arith.constant 0 : index
    %66 = vector.load %arg11[%c0_38, %c0_39] : memref<1x32xf32, #tpu.memory_space<vmem>>, vector<1x32xf32>
    %67 = vector.broadcast %66 : vector<1x32xf32> to vector<2x32xf32>
    %68 = arith.addf %65, %67 : vector<2x32xf32>
    %69 = arith.negf %68 : vector<2x32xf32>
    %70 = math.exp %69 : vector<2x32xf32>
    %cst_40 = arith.constant 1.000000e+00 : f32
    %71 = vector.broadcast %cst_40 : f32 to vector<2x32xf32>
    %72 = arith.addf %71, %70 : vector<2x32xf32>
    %73 = arith.divf %71, %72 : vector<2x32xf32>
    %74 = arith.mulf %73, %63 : vector<2x32xf32>
    %c0_41 = arith.constant 0 : index
    %c0_42 = arith.constant 0 : index
    %c0_43 = arith.constant 0 : index
    %75 = vector.load %arg4[%c0_41, %c0_42, %c0_43] : memref<1x2x32xf32, #tpu.memory_space<vmem>>, vector<1x2x32xf32>
    %76 = vector.shape_cast %75 : vector<1x2x32xf32> to vector<2x32xf32>
    %77 = arith.truncf %76 : vector<2x32xf32> to vector<2x32xbf16>
    %c0_44 = arith.constant 0 : index
    %c0_45 = arith.constant 0 : index
    %78 = vector.load %arg12[%c0_44, %c0_45] : memref<32x128xbf16, #tpu.memory_space<vmem>>, vector<32x128xbf16>
    %cst_46 = arith.constant dense<0.000000e+00> : vector<2x128xf32>
    %79 = tpu.matmul %77, %78, %cst_46 {dimension_numbers = #tpu.dot_dimension_numbers<[1], [0], [0], [1], [0, 0, 1, 1], [], []>} : vector<2x32xbf16>, vector<32x128xbf16>, vector<2x128xf32> -> vector<2x128xf32>
    %80 = arith.truncf %74 : vector<2x32xf32> to vector<2x32xbf16>
    %c0_47 = arith.constant 0 : index
    %c0_48 = arith.constant 0 : index
    %81 = vector.load %arg13[%c0_47, %c0_48] : memref<32x128xbf16, #tpu.memory_space<vmem>>, vector<32x128xbf16>
    %cst_49 = arith.constant dense<0.000000e+00> : vector<2x128xf32>
    %82 = tpu.matmul %80, %81, %cst_49 {dimension_numbers = #tpu.dot_dimension_numbers<[1], [0], [0], [1], [0, 0, 1, 1], [], []>} : vector<2x32xbf16>, vector<32x128xbf16>, vector<2x128xf32> -> vector<2x128xf32>
    %83 = arith.addf %79, %82 : vector<2x128xf32>
    %c0_50 = arith.constant 0 : index
    %c0_51 = arith.constant 0 : index
    %84 = vector.load %arg14[%c0_50, %c0_51] : memref<32x128xbf16, #tpu.memory_space<vmem>>, vector<32x128xbf16>
    %cst_52 = arith.constant dense<0.000000e+00> : vector<2x128xf32>
    %85 = tpu.matmul %5, %84, %cst_52 {dimension_numbers = #tpu.dot_dimension_numbers<[1], [0], [0], [1], [0, 0, 1, 1], [], []>} : vector<2x32xbf16>, vector<32x128xbf16>, vector<2x128xf32> -> vector<2x128xf32>
    %86 = arith.addf %83, %85 : vector<2x128xf32>
    %c0_53 = arith.constant 0 : index
    %c0_54 = arith.constant 0 : index
    %87 = vector.load %arg15[%c0_53, %c0_54] : memref<1x128xf32, #tpu.memory_space<vmem>>, vector<1x128xf32>
    %88 = vector.broadcast %87 : vector<1x128xf32> to vector<2x128xf32>
    %89 = arith.addf %86, %88 : vector<2x128xf32>
    %90 = vector.extract_strided_slice %89 {offsets = [0, 0], sizes = [2, 32], strides = [1, 1]} : vector<2x128xf32> to vector<2x32xf32>
    %91 = arith.negf %90 : vector<2x32xf32>
    %92 = math.exp %91 : vector<2x32xf32>
    %cst_55 = arith.constant 1.000000e+00 : f32
    %93 = vector.broadcast %cst_55 : f32 to vector<2x32xf32>
    %94 = arith.addf %93, %92 : vector<2x32xf32>
    %95 = arith.divf %93, %94 : vector<2x32xf32>
    %96 = vector.extract_strided_slice %89 {offsets = [0, 32], sizes = [2, 32], strides = [1, 1]} : vector<2x128xf32> to vector<2x32xf32>
    %97 = arith.negf %96 : vector<2x32xf32>
    %98 = math.exp %97 : vector<2x32xf32>
    %cst_56 = arith.constant 1.000000e+00 : f32
    %99 = vector.broadcast %cst_56 : f32 to vector<2x32xf32>
    %100 = arith.addf %99, %98 : vector<2x32xf32>
    %101 = arith.divf %99, %100 : vector<2x32xf32>
    %102 = vector.extract_strided_slice %89 {offsets = [0, 64], sizes = [2, 32], strides = [1, 1]} : vector<2x128xf32> to vector<2x32xf32>
    %103 = math.tanh %102 : vector<2x32xf32>
    %104 = vector.extract_strided_slice %89 {offsets = [0, 96], sizes = [2, 32], strides = [1, 1]} : vector<2x128xf32> to vector<2x32xf32>
    %105 = arith.negf %104 : vector<2x32xf32>
    %106 = math.exp %105 : vector<2x32xf32>
    %cst_57 = arith.constant 1.000000e+00 : f32
    %107 = vector.broadcast %cst_57 : f32 to vector<2x32xf32>
    %108 = arith.addf %107, %106 : vector<2x32xf32>
    %109 = arith.divf %107, %108 : vector<2x32xf32>
    %110 = arith.mulf %101, %4 : vector<2x32xf32>
    %111 = arith.mulf %95, %103 : vector<2x32xf32>
    %112 = arith.addf %110, %111 : vector<2x32xf32>
    %113 = math.tanh %112 : vector<2x32xf32>
    %114 = arith.mulf %109, %113 : vector<2x32xf32>
    %c0_58 = arith.constant 0 : index
    %c0_59 = arith.constant 0 : index
    %115 = vector.load %arg25[%c0_58, %c0_59] : memref<2x32xf32, #tpu.memory_space<vmem>>, vector<2x32xf32>
    tpu.vector_store %arg25[%c0_58, %c0_59], %114 {strides = array<i32>} : memref<2x32xf32, #tpu.memory_space<vmem>>, vector<2x32xf32>,
    %c0_60 = arith.constant 0 : index
    %c0_61 = arith.constant 0 : index
    %116 = vector.load %arg26[%c0_60, %c0_61] : memref<2x32xf32, #tpu.memory_space<vmem>>, vector<2x32xf32>
    tpu.vector_store %arg26[%c0_60, %c0_61], %112 {strides = array<i32>} : memref<2x32xf32, #tpu.memory_space<vmem>>, vector<2x32xf32>,
    %117 = arith.truncf %114 : vector<2x32xf32> to vector<2x32xbf16>
    %c0_62 = arith.constant 0 : index
    %c0_63 = arith.constant 0 : index
    %118 = vector.load %arg16[%c0_62, %c0_63] : memref<32x48xbf16, #tpu.memory_space<vmem>>, vector<32x48xbf16>
    %cst_64 = arith.constant dense<0.000000e+00> : vector<2x48xf32>
    %119 = tpu.matmul %117, %118, %cst_64 {dimension_numbers = #tpu.dot_dimension_numbers<[1], [0], [0], [1], [0, 0, 1, 1], [], []>} : vector<2x32xbf16>, vector<32x48xbf16>, vector<2x48xf32> -> vector<2x48xf32>
    %c0_65 = arith.constant 0 : index
    %c0_66 = arith.constant 0 : index
    %120 = vector.load %arg17[%c0_65, %c0_66] : memref<1x48xf32, #tpu.memory_space<vmem>>, vector<1x48xf32>
    %121 = vector.broadcast %120 : vector<1x48xf32> to vector<2x48xf32>
    %122 = arith.addf %119, %121 : vector<2x48xf32>
    %c0_67 = arith.constant 0 : index
    %c0_68 = arith.constant 0 : index
    %123 = vector.load %arg1[%c0_67, %c0_68] : memref<2x1xi32, #tpu.memory_space<vmem>>, vector<2x1xi32>
    %124 = vector.broadcast %arg0 : i32 to vector<2x1xi32>
    %125 = arith.cmpi sgt, %123, %124 : vector<2x1xi32>
    %cst_69 = arith.constant 0.000000e+00 : f32
    %126 = vector.shape_cast %125 : vector<2x1xi1> to vector<2x1xi1>
    %127 = vector.broadcast %126 : vector<2x1xi1> to vector<2x48xi1>
    %128 = vector.broadcast %cst_69 : f32 to vector<2x48xf32>
    %129 = arith.select %127, %122, %128 : vector<2x48xi1>, vector<2x48xf32>
    %c0_70 = arith.constant 0 : index
    %c0_71 = arith.constant 0 : index
    %c0_72 = arith.constant 0 : index
    %130 = vector.load %arg22[%c0_70, %c0_71, %c0_72] : memref<1x2x48xf32, #tpu.memory_space<vmem>>, vector<1x2x48xf32>
    %131 = vector.shape_cast %130 : vector<1x2x48xf32> to vector<2x48xf32>
    %132 = vector.shape_cast %129 : vector<2x48xf32> to vector<1x2x48xf32>
    tpu.vector_store %arg22[%c0_70, %c0_71, %c0_72], %132 {strides = array<i32>} : memref<1x2x48xf32, #tpu.memory_space<vmem>>, vector<1x2x48xf32>,
    %cst_73 = arith.constant 0.000000e+00 : f32
    %133 = vector.shape_cast %125 : vector<2x1xi1> to vector<2x1xi1>
    %134 = vector.broadcast %133 : vector<2x1xi1> to vector<2x16xi1>
    %135 = vector.broadcast %cst_73 : f32 to vector<2x16xf32>
    %136 = arith.select %134, %62, %135 : vector<2x16xi1>, vector<2x16xf32>
    %c0_74 = arith.constant 0 : index
    %c0_75 = arith.constant 0 : index
    %c0_76 = arith.constant 0 : index
    %137 = vector.load %arg23[%c0_74, %c0_75, %c0_76] : memref<1x2x16xf32, #tpu.memory_space<vmem>>, vector<1x2x16xf32>
    %138 = vector.shape_cast %137 : vector<1x2x16xf32> to vector<2x16xf32>
    %139 = vector.shape_cast %136 : vector<2x16xf32> to vector<1x2x16xf32>
    tpu.vector_store %arg23[%c0_74, %c0_75, %c0_76], %139 {strides = array<i32>} : memref<1x2x16xf32, #tpu.memory_space<vmem>>, vector<1x2x16xf32>,
    return
  }
  func.func @transform_0(%arg0: i32) -> (i32, i32) {
    %c0_i32 = arith.constant 0 : i32
    %c0_i32_0 = arith.constant 0 : i32
    %c0_i32_1 = arith.constant 0 : i32
    return %c0_i32, %c0_i32_0 : i32, i32
  }
  func.func @transform_1(%arg0: i32) -> (i32, i32, i32) {
    %c0_i32 = arith.constant 0 : i32
    %c0_i32_0 = arith.constant 0 : i32
    %c0_i32_1 = arith.constant 0 : i32
    %c0_i32_2 = arith.constant 0 : i32
    return %c0_i32, %c0_i32_0, %c0_i32_1 : i32, i32, i32
  }
  func.func @transform_2(%arg0: i32) -> (i32, i32, i32) {
    %c0_i32 = arith.constant 0 : i32
    %c0_i32_0 = arith.constant 0 : i32
    %c0_i32_1 = arith.constant 0 : i32
    %c0_i32_2 = arith.constant 0 : i32
    return %c0_i32, %c0_i32_0, %c0_i32_1 : i32, i32, i32
  }
  func.func @transform_3(%arg0: i32) -> (i32, i32, i32) {
    %c0_i32 = arith.constant 0 : i32
    %c0_i32_0 = arith.constant 0 : i32
    %c0_i32_1 = arith.constant 0 : i32
    return %arg0, %c0_i32, %c0_i32_0 : i32, i32, i32
  }
  func.func @transform_4(%arg0: i32) -> (i32, i32) {
    %c0_i32 = arith.constant 0 : i32
    %c0_i32_0 = arith.constant 0 : i32
    %c0_i32_1 = arith.constant 0 : i32
    return %c0_i32, %c0_i32_0 : i32, i32
  }
  func.func @transform_5(%arg0: i32) -> (i32, i32) {
    %c0_i32 = arith.constant 0 : i32
    %c0_i32_0 = arith.constant 0 : i32
    %c0_i32_1 = arith.constant 0 : i32
    return %c0_i32, %c0_i32_0 : i32, i32
  }
  func.func @transform_6(%arg0: i32) -> (i32, i32) {
    %c0_i32 = arith.constant 0 : i32
    %c0_i32_0 = arith.constant 0 : i32
    %c0_i32_1 = arith.constant 0 : i32
    return %c0_i32, %c0_i32_0 : i32, i32
  }
  func.func @transform_7(%arg0: i32) -> (i32, i32) {
    %c0_i32 = arith.constant 0 : i32
    %c0_i32_0 = arith.constant 0 : i32
    %c0_i32_1 = arith.constant 0 : i32
    return %c0_i32, %c0_i32_0 : i32, i32
  }
  func.func @transform_8(%arg0: i32) -> (i32, i32) {
    %c0_i32 = arith.constant 0 : i32
    %c0_i32_0 = arith.constant 0 : i32
    %c0_i32_1 = arith.constant 0 : i32
    return %c0_i32, %c0_i32_0 : i32, i32
  }
  func.func @transform_9(%arg0: i32) -> (i32, i32) {
    %c0_i32 = arith.constant 0 : i32
    %c0_i32_0 = arith.constant 0 : i32
    %c0_i32_1 = arith.constant 0 : i32
    return %c0_i32, %c0_i32_0 : i32, i32
  }
  func.func @transform_10(%arg0: i32) -> (i32, i32) {
    %c0_i32 = arith.constant 0 : i32
    %c0_i32_0 = arith.constant 0 : i32
    %c0_i32_1 = arith.constant 0 : i32
    return %c0_i32, %c0_i32_0 : i32, i32
  }
  func.func @transform_11(%arg0: i32) -> (i32, i32) {
    %c0_i32 = arith.constant 0 : i32
    %c0_i32_0 = arith.constant 0 : i32
    %c0_i32_1 = arith.constant 0 : i32
    return %c0_i32, %c0_i32_0 : i32, i32
  }
  func.func @transform_12(%arg0: i32) -> (i32, i32) {
    %c0_i32 = arith.constant 0 : i32
    %c0_i32_0 = arith.constant 0 : i32
    %c0_i32_1 = arith.constant 0 : i32
    return %c0_i32, %c0_i32_0 : i32, i32
  }
  func.func @transform_13(%arg0: i32) -> (i32, i32) {
    %c0_i32 = arith.constant 0 : i32
    %c0_i32_0 = arith.constant 0 : i32
    %c0_i32_1 = arith.constant 0 : i32
    return %c0_i32, %c0_i32_0 : i32, i32
  }
  func.func @transform_14(%arg0: i32) -> (i32, i32) {
    %c0_i32 = arith.constant 0 : i32
    %c0_i32_0 = arith.constant 0 : i32
    %c0_i32_1 = arith.constant 0 : i32
    return %c0_i32, %c0_i32_0 : i32, i32
  }
  func.func @transform_15(%arg0: i32) -> (i32, i32) {
    %c0_i32 = arith.constant 0 : i32
    %c0_i32_0 = arith.constant 0 : i32
    %c0_i32_1 = arith.constant 0 : i32
    return %c0_i32, %c0_i32_0 : i32, i32
  }
  func.func @transform_16(%arg0: i32) -> (i32, i32) {
    %c0_i32 = arith.constant 0 : i32
    %c0_i32_0 = arith.constant 0 : i32
    %c0_i32_1 = arith.constant 0 : i32
    return %c0_i32, %c0_i32_0 : i32, i32
  }
  func.func @transform_17(%arg0: i32) -> (i32, i32) {
    %c0_i32 = arith.constant 0 : i32
    %c0_i32_0 = arith.constant 0 : i32
    %c0_i32_1 = arith.constant 0 : i32
    return %c0_i32, %c0_i32_0 : i32, i32
  }
  func.func @transform_18(%arg0: i32) -> (i32, i32) {
    %c0_i32 = arith.constant 0 : i32
    %c0_i32_0 = arith.constant 0 : i32
    %c0_i32_1 = arith.constant 0 : i32
    return %c0_i32, %c0_i32_0 : i32, i32
  }
  func.func @transform_19(%arg0: i32) -> (i32, i32) {
    %c0_i32 = arith.constant 0 : i32
    %c0_i32_0 = arith.constant 0 : i32
    %c0_i32_1 = arith.constant 0 : i32
    return %c0_i32, %c0_i32_0 : i32, i32
  }
  func.func @transform_20(%arg0: i32) -> (i32, i32) {
    %c0_i32 = arith.constant 0 : i32
    %c0_i32_0 = arith.constant 0 : i32
    %c0_i32_1 = arith.constant 0 : i32
    return %c0_i32, %c0_i32_0 : i32, i32
  }
  func.func @transform_21(%arg0: i32) -> (i32, i32, i32) {
    %c0_i32 = arith.constant 0 : i32
    %c0_i32_0 = arith.constant 0 : i32
    %c0_i32_1 = arith.constant 0 : i32
    return %arg0, %c0_i32, %c0_i32_0 : i32, i32, i32
  }
  func.func @transform_22(%arg0: i32) -> (i32, i32, i32) {
    %c0_i32 = arith.constant 0 : i32
    %c0_i32_0 = arith.constant 0 : i32
    %c0_i32_1 = arith.constant 0 : i32
    return %arg0, %c0_i32, %c0_i32_0 : i32, i32, i32
  }
}

</mosaic_0001>

<bundles_post_ra>
// kernel: tpu_custom_call.1
= control target key start
LH: loop header
LB: loop body
LE: loop exit
PB: predicated region body
PF: predicated region fallthrough
CT: control target
= control target key end

     0   :  { %s3297_s0 = inlined_call_operand.vmem [shape: s32[2,1], index: 0, kind: input, shape index: {}]   ;;  %s3298_s1 = inlined_call_operand.vmem [shape: f32[2,16,32], index: 1, kind: input, shape index: {}]   ;;  %s3299_s2 = inlined_call_operand.vmem [shape: f32[2,32,16], index: 2, kind: input, shape index: {}]   ;;  %s3300_s3 = inlined_call_operand.hbm [shape: f32[7,2,32], index: 3, kind: input, shape index: {}]   ;;  %s3301_s4 = inlined_call_operand.vmem [shape: bf16[32,32], index: 4, kind: input, shape index: {}]   ;;  %s3302_s5 = inlined_call_operand.vmem [shape: f32[32,1], index: 5, kind: input, shape index: {}]   ;;  %s3303_s6 = inlined_call_operand.vmem [shape: bf16[32,32], index: 6, kind: input, shape index: {}]   ;;  %s3304_s7 = inlined_call_operand.vmem [shape: f32[32,1], index: 7, kind: input, shape index: {}]   ;;  %s3305_s8 = inlined_call_operand.<no memory space> [shape: f32[1,1], index: 8, kind: input, shape index: {}]   ;;  %s3306_s9 = inlined_call_operand.vmem [shape: bf16[32,32], index: 9, kind: input, shape index: {}]   ;;  %s3307_s10 = inlined_call_operand.hbm [shape: f32[1,32], index: 10, kind: input, shape index: {}]   ;;  %s3308_s11 = inlined_call_operand.vmem [shape: bf16[32,128], index: 11, kind: input, shape index: {}]   ;;  %s3309_s12 = inlined_call_operand.vmem [shape: bf16[32,128], index: 12, kind: input, shape index: {}]   ;;  %s3310_s13 = inlined_call_operand.vmem [shape: bf16[32,128], index: 13, kind: input, shape index: {}]   ;;  %s3311_s14 = inlined_call_operand.hbm [shape: f32[1,128], index: 14, kind: input, shape index: {}]   ;;  %s3312_s15 = inlined_call_operand.vmem [shape: bf16[32,48], index: 15, kind: input, shape index: {}]   ;;  %s3313_s16 = inlined_call_operand.hbm [shape: f32[1,48], index: 16, kind: input, shape index: {}]   ;;  %s3314_s17 = inlined_call_operand.vmem [shape: bf16[32,32], index: 17, kind: input, shape index: {}]   ;;  %s3315_s18 = inlined_call_operand.vmem [shape: f32[1,32], index: 18, kind: input, shape index: {}]   ;;  %s3316_s19 = inlined_call_operand.hbm [shape: bf16[32,32], index: 19, kind: input, shape index: {}]   ;;  %s3317_s20 = inlined_call_operand.vmem [shape: f32[1,32], index: 20, kind: input, shape index: {}]   ;;  %s3318_s21 = inlined_call_operand.hbm [shape: f32[7,2,48], index: 21, kind: output, shape index: {0}]   ;;  %s3319_s22 = inlined_call_operand.hbm [shape: f32[7,2,16], index: 22, kind: output, shape index: {1}]  }
   0x1   :  { %3340 = sst [smem:[#allocation29_spill]] %s3297_s0  ;;  %v28_v0 = vstv %s3305_s8 }
   0x2   :  { %3341 = sst [smem:[#allocation30_spill]] %s3298_s1  ;;  %29 = vst [vmem:[#allocation5] sm:$0x1] %v28_v0 }
   0x3   :  { %3342 = sst [smem:[#allocation31_spill]] %s3299_s2 }
   0x4   :  { %3343 = sst [smem:[#allocation32_spill]] %s3300_s3 }
   0x5   :  { %3344 = sst [smem:[#allocation33_spill]] %s3301_s4 }
   0x6   :  { %3345 = sst [smem:[#allocation34_spill]] %s3302_s5 }
   0x7   :  { %3346 = sst [smem:[#allocation35_spill]] %s3303_s6 }
   0x8   :  { %3347 = sst [smem:[#allocation36_spill]] %s3304_s7 }
   0x9   :  { %3348 = sst [smem:[#allocation37_spill]] %s3307_s10 }
   0xa   :  { %3349 = sst [smem:[#allocation38_spill]] %s3311_s14 }
   0xb   :  { %3350 = sst [smem:[#allocation39_spill]] %s3313_s16 }
   0xc   :  { %3351 = sst [smem:[#allocation40_spill]] %s3316_s19 }
   0xd   :  { %30 = vsyncpa [#allocation7], 0 }
   0xe   :  { %32 = vsyncpa [#allocation7 + $0x1], 0 }
   0xf   :  { %33 = vsyncpa [#allocation10], 0 }
  0x10   :  { %34 = vsyncpa [#allocation13], 0 }
  0x11   :  { %35 = vsyncpa [#allocation8], 0 }
  0x12   :  { %37 = vsyncpa [#allocation8 + $0x1], 0 }
  0x13   :  { %38 = vsyncpa [#allocation17], 0 }
  0x14   :  { %40 = vsyncpa [#allocation17 + $0x1], 0  ;;  %s2812_s29 = smov 0   ;;  %s2814_s30 = smov 0  }
  0x15   :  { %s2816_s4 = smov 0   ;;  %s2818_s0 = smov 0  }
  0x16 LB: > { %3352 = sst [smem:[#allocation23_spill]] %s2661_s29  ;;  %s2675_s8 = smov [#allocation9]   ;;  %s2673_s0 = sphi %s2818_s0, %s3394_s0   ;;  %s2669_s4 = sphi %s2816_s4, %s3396_s4   ;;  %s2665_s30 = sphi %s2814_s30, %s3398_s30   ;;  %s2661_s29 = sphi %s2812_s29, %s3397_s29  }
  0x17   : > { %3353 = sst [smem:[#allocation24_spill]] %s2669_s4  ;;  %s589_s23 = sshll.u32 %s2675_s8, 4  ;;  %s590_s23 = int_to_ptr.vmem [resolvable:$true] %s589_s23 }
  0x18   : > { %3354 = sst [smem:[#allocation25_spill]] %s2673_s0  ;;  %s2833_s1 = sadd.s32 4294967295, %s2673_s0  }
  0x19   : > { %p2079_p0 = scmp.ge.s32.totalorder %s2673_s0, 1  ;;  %p3331_p1 = scmp.eq.s32.totalorder %s2833_s1, 0 }
  0x1a   : > { %p549_p2 = scmp.lt.s32.totalorder %s2673_s0, 8  ;;  %s2676_s24 = smov [#allocation12]  }
  0x1b   : > { %s623_s6 = sshll.u32 %s2676_s24, 4  ;;  %s2677_s25 = smov [#allocation11]   ;;  %s2845_s6 = int_to_ptr.vmem [resolvable:$true] %s623_s6 }
  0x1c   : > { %p2839_p4 = pnand %p2079_p0, %p549_p2  ;;  %s609_s26 = sshll.u32 %s2677_s25, 4  ;;  %s2853_s26 = int_to_ptr.vmem [resolvable:$true] %s609_s26 }
  0x1d   : > { %s2678_s27 = smov [#allocation14]   ;;  %s2450_s28 = scalar_lea.vmem %s590_s23, 16 }
  0x1e   : > { %s3355_s5 = scalar_select %p2839_p4, 1, 0 }
  0x1f   : > { %p2305_p5 = pneg %p2839_p4  ;;  %s2855_s3 = sshll.u32 %s2678_s27, 4  ;;  %s640_s3 = int_to_ptr.vmem [resolvable:$true] %s2855_s3 }
  0x20   : > { %p2451_p8 = scmp.ne.s32.totalorder %s590_s23, %s2450_s28  ;;  %s2457_s8 = scalar_lea.vmem %s590_s23, 32 }
  0x21   : > { %p2849_p6 = pnand %p2305_p5, %p3331_p1  ;;  %p2458_p11 = scmp.lt.s32.totalorder %s590_s23, %s590_s23 }
  0x22   : > { %p2459_p12 = scmp.lt.s32.totalorder %s2457_s8, %s2450_s28 }
  0x23   : > { %p2441_p7 = pneg %p2849_p6 }
  0x24   : > { %p2460_p13 = por %p2459_p12, %p2458_p11 }
  0x25   : > { %p2453_p9 = pnand %p2451_p8, %p2441_p7 }
  0x27   : > { %p2454_p10 = pneg %p2453_p9 }
  0x29   : > { %p2461_p0 = pnand %p2460_p13, %p2454_p10 }
  0x2b   : > { %2464 = shalt.err (!%p2461_p0)
}
  0x2c   : > { %s3357_s10 = sld [smem:[#allocation37_spill]]  ;;  %s2476_s27 = scalar_lea.vmem %s2845_s6, 16 }
  0x2d   : > { %p2477_p2 = scmp.ne.s32.totalorder %s2845_s6, %s2476_s27  ;;  %s2483_s28 = scalar_lea.vmem %s2845_s6, 32 }
  0x2e   : > { %p2484_p9 = scmp.lt.s32.totalorder %s2845_s6, %s2845_s6  ;;  %p2485_p10 = scmp.lt.s32.totalorder %s2483_s28, %s2476_s27 }
  0x2f   : > { %p2479_p5 = pnand %p2477_p2, %p2441_p7 }
  0x30   : > { %p2486_p11 = por %p2485_p10, %p2484_p9 }
  0x31   : > { %p2480_p8 = pneg %p2479_p5 }
  0x32   : > { %2308 = dma.hbm_to_vmem [thread:$0]  (!%p2849_p6), %s3357_s10, 16, %s590_s23, [#allocation10]  }
  0x33   : > { %p2487_p12 = pnand %p2486_p11, %p2480_p8 }
  0x35   : > { %2490 = shalt.err (!%p2487_p12)
}
  0x36   : > { %s3358_s16 = sld [smem:[#allocation39_spill]]  ;;  %s2502_s23 = scalar_lea.vmem %s2853_s26, 16 }
  0x37   : > { %p2503_p13 = scmp.ne.s32.totalorder %s2853_s26, %s2502_s23  ;;  %s2509_s25 = scalar_lea.vmem %s2853_s26, 32 }
  0x38   : > { %p2510_p5 = scmp.lt.s32.totalorder %s2853_s26, %s2853_s26  ;;  %p2511_p8 = scmp.lt.s32.totalorder %s2509_s25, %s2502_s23 }
  0x39   : > { %p2505_p0 = pnand %p2503_p13, %p2441_p7 }
  0x3a   : > { %p2512_p9 = por %p2511_p8, %p2510_p5 }
  0x3b   : > { %p2506_p2 = pneg %p2505_p0 }
  0x3c   : > { %2314 = dma.hbm_to_vmem [thread:$0]  (!%p2849_p6), %s3358_s16, 16, %s2845_s6, [#allocation13]  }
  0x3d   : > { %p2513_p10 = pnand %p2512_p9, %p2506_p2 }
  0x3f   : > { %2516 = shalt.err (!%p2513_p10)
}
  0x40   : > { %s3359_s14 = sld [smem:[#allocation38_spill]]  ;;  %s2528_s6 = scalar_lea.vmem %s640_s3, 256 }
  0x41   : > { %p2529_p11 = scmp.ne.s32.totalorder %s640_s3, %s2528_s6  ;;  %p2536_p0 = scmp.lt.s32.totalorder %s640_s3, %s640_s3 }
  0x42   : > { %p2537_p5 = scmp.lt.s32.totalorder %s2528_s6, %s2528_s6 }
  0x43   : > { %p2531_p12 = pnand %p2529_p11, %p2441_p7 }
  0x44   : > { %p2538_p2 = por %p2537_p5, %p2536_p0 }
  0x45   : > { %p2532_p13 = pneg %p2531_p12 }
  0x46   : > { %2311 = dma.hbm_to_vmem [thread:$0]  (!%p2849_p6), %s3359_s14, 16, %s2853_s26, [#allocation10]  }
  0x47   : > { %p2539_p8 = pnand %p2538_p2, %p2532_p13 }
  0x49   : > { %2542 = shalt.err (!%p2539_p8)
}
  0x4a   : > { %s2679_s8 = smov 64   ;;  %s2680_s26 = smov 4  }
  0x4b   : > { %s3360_s19 = sld [smem:[#allocation40_spill]]  ;;  %s2078_s25 = sadd.s32 4294967294, %s2673_s0  }
  0x4c   : > { %s2906_s27 = sadd.s32 1, %s2673_s0   ;;  %s116_s6 = sadd.s32 1, %s2669_s4 }
  0x4d   : > { %3361 = sst [smem:[#allocation26_spill]] %s2906_s27  ;;  %s113_s28 = ssub.s32 %s2673_s0, %s2906_s27 }
  0x4e   : > { %p114_p7 = scmp.eq.s32.totalorder %s113_s28, 0  ;;  %p123_p9 = scmp.ne.s32.totalorder %s2669_s4, %s2665_s30 }
  0x4f   : > { %p124_p10 = scmp.eq.s32.totalorder %s2673_s0, 0  ;;  %p129_p11 = scmp.ne.s32.totalorder %s2665_s30, %s2661_s29 }
  0x50   : > { %s2917_s10 = scalar_select %p114_p7, %s2669_s4, %s116_s6  }
  0x51   : > { %2317 = dma.hbm_to_vmem [thread:$0]  (!%p2849_p6), %s3360_s19, 256, %s640_s3, [#allocation13], %s2679_s8, %s2679_s8, %s2680_s26  }
  0x52   : > { %3362 = sst [smem:[#allocation27_spill]] %s2917_s10  ;;  %p2919_p12 = por %p124_p10, %p123_p9 }
  0x53   : > { %p2925_p6 = por %p3331_p1, %p129_p11  ;;  %p510_p13 = scmp.eq.s32.totalorder %s2833_s1, 6 }
  0x54   : > { %p516_p0 = scmp.eq.s32.totalorder %s2078_s25, 6  ;;  %p2333_p5 = scmp.lt.s32.totalorder %s2673_s0, 7 }
  0x55   : > { %s3364_s3 = scalar_select %p2925_p6, 1, 0 }
  0x56   : > { %s656_s8 = sand.u32 1, %s2669_s4   ;;  %p2932_p2 = por %p510_p13, %p123_p9 }
  0x57   : > { %p2936_p8 = por %p516_p0, %p129_p11  ;;  %s2085_s23 = sshll.u32 %s656_s8, 1 }
  0x58   : > { %s3365_s26 = scalar_select %p2932_p2, 1, 0 }
  0x59   : > { %s3366_s24 = scalar_select %p2936_p8, 1, 0 }
  0x5a   : > { %s2086_s28 = sshll.u32 %s2673_s0, 5  ;;  %s3368_s16 = sld [smem:[#allocation32_spill]] }
  0x5b   : > { %3367 = sst [smem:[#allocation28_spill]] %s3366_s24  ;;  %s660_s25 = scalar_lea.vmem [#allocation6], %s2085_s23 }
  0x5c   : > { %s667_s10 = sshll.u32 %s660_s25, 4  ;;  %p2948_p7 = pnand %p2333_p5, %p2919_p12  ;;  %s668_s10 = int_to_ptr.vmem [resolvable:$true] %s667_s10 }
  0x5d   : > { %s657_s27 = scalar_lea.sflag [#allocation7], %s656_s8 }
  0x5e   : > { %p2545_p10 = pneg %p2948_p7 }
  0x60   : > { %s2944_s19 = scalar_lea.hbm %s3368_s16, %s2086_s28  ;;  %s2548_s6 = scalar_lea.hbm %s3368_s16, 224 }
  0x61   : > { %s2543_s24 = scalar_lea.hbm %s2944_s19, 32  ;;  %p2549_p0 = scmp.lt.s32.totalorder %s2944_s19, %s3368_s16 }
  0x62   : > { %p2544_p9 = scmp.ne.s32.totalorder %s2944_s19, %s2543_s24  ;;  %p2550_p12 = scmp.lt.s32.totalorder %s2548_s6, %s2543_s24 }
  0x64   : > { %p2546_p11 = pnand %p2545_p10, %p2544_p9  ;;  %p2551_p5 = por %p2550_p12, %p2549_p0 }
  0x66   : > { %p2547_p13 = pneg %p2546_p11 }
  0x68   : > { %p2552_p3 = pnand %p2551_p5, %p2547_p13 }
  0x6a   : > { %2555 = shalt.err (!%p2552_p3)
}
  0x6b   : > { %s2556_s2 = scalar_lea.vmem %s668_s10, 32  ;;  %s2681_s8 = smov [#allocation6]  }
  0x6c   : > { %p2557_p1 = scmp.ne.s32.totalorder %s668_s10, %s2556_s2  ;;  %s2561_s29 = sshll.u32 %s2681_s8, 4  ;;  %s2562_s29 = int_to_ptr.vmem [resolvable:$false] %s2561_s29 }
  0x6d   : > { %s2563_s0 = scalar_lea.vmem %s2562_s29, 64  ;;  %p2564_p9 = scmp.lt.s32.totalorder %s668_s10, %s2562_s29 }
  0x6e   : > { %p2559_p8 = pnand %p2557_p1, %p2545_p10  ;;  %p2565_p11 = scmp.lt.s32.totalorder %s2563_s0, %s2556_s2 }
  0x70   : > { %p2560_p2 = pneg %p2559_p8  ;;  %p2566_p6 = por %p2565_p11, %p2564_p9 }
  0x72   : > { %p2567_p4 = pnand %p2566_p6, %p2560_p2 }
  0x74   : > { %2570 = shalt.err (!%p2567_p4)
}
  0x75   : > { %2321 = dma.hbm_to_vmem [thread:$0]  (!%p2948_p7), %s2944_s19, 32, %s668_s10, %s657_s27  }
  0x76   : > { %p3370_p13 = scmp.ne.s32.totalorder %s3355_s5, 0 }
  0x77   : > { %s2969_s24 = sand.u32 (!%p3370_p13), 1, %s2665_s30   ;;  %p3371_p1 = scmp.ne.s32.totalorder (!%p3370_p13), %s3364_s3, 0 }
  0x78   : > { %676 = sbr.rel (%p3370_p13) target bundleno = 2164 (0x874), region = 104  ;;  %s2972_s14 = sshll.u32 (!%p3370_p13), %s2969_s24, 1 }
  0x79   : > { %s679_s29 = scalar_lea.sflag (!%p3370_p13), [#allocation7], %s2969_s24  ;;  %s682_s0 = scalar_lea.vmem (!%p3370_p13), [#allocation6], %s2972_s14 }
  0x7d   : > { %2640 = dma.done.wait (%p3371_p1), %s679_s29, 32  }
  0x7e   : > { %2642 = vsyncadd (%p3371_p1), %s679_s29, 4294967264  ;;  %p3372_p3 = scmp.eq.s32.totalorder %s2833_s1, 0 }
  0x80   : > { %2644 = dma.done.wait (%p3372_p3), [#allocation10], 32   ;;  %p3373_p4 = pmov %p3372_p3 }
  0x81   : > { %p3374_p6 = pmov %p3372_p3 }
  0x82   : > { %2646 = vsyncadd (%p3373_p4), [#allocation10], 4294967264 }
  0x83   : > { %2648 = dma.done.wait (%p3374_p6), [#allocation13], 272   ;;  %p3375_p2 = pmov %p3372_p3 }
  0x84   : > { %s763_s19 = scalar_lea.vmem [#allocation16], %s2972_s14  ;;  %p3376_p8 = scmp.ne.s32.totalorder %s2833_s1, 0 }
  0x85   : > { %2650 = vsyncadd (%p3375_p2), [#allocation13], 4294967024  ;;  %s3377_s27 = sld [smem:[#allocation31_spill]] (!%p3376_p8) }
  0x86   : > { %768 = sbr.rel (%p3376_p8) target bundleno = 365 (0x16d), region = 128  ;;  %s3378_s2 = sld [smem:[#allocation33_spill]] (!%p3376_p8) }
  0x87   : > { %s3379_s10 = sld [smem:[#allocation30_spill]] (!%p3376_p8) }
  0x88   : > { %s3380_s29 = sld [smem:[#allocation34_spill]] (!%p3376_p8) }
  0x8b   : > { %v789_v1 = vld [vmem:[%s3377_s27 + $0x10] sm:$0xff]  ;;  %v790_v2 = vld [vmem:[%s3377_s27 + $0x18] sm:$0xff]  ;;  %v787_v6 = vld [vmem:[%s3377_s27] sm:$0xff]  ;;  %v2682_v12 = vmov 0   ;;  %vm771_vm0 = vcmask 261120   ;;  %v2683_v19 = vmov 0.0  }
  0x8c   : > { %v2104_v3 = vld [vmem:[%s3377_s27 + $0x30] sm:$0xff]  ;;  %v792_v4 = vpack.c.bf16 %v790_v2, %v789_v1  ;;  %v2105_v5 = vld [vmem:[%s3377_s27 + $0x38] sm:$0xff]  ;;  %v788_v7 = vld [vmem:[%s3377_s27 + $0x8] sm:$0xff]  ;;  %2388 = vset.pattern.permute.xlu1 %v2682_v12  ;;  %2387 = vset.pattern.permute.xlu0 %v2682_v12  ;;  %vm2684_vm1 = vmmov 0   ;;  %vm1005_vm2 = vcmask 1040384   ;;  %vm882_vm3 = vcmask 130048  }
  0x8d   : > { %v910_v8 = vpack.c.bf16 %v2105_v5, %v2104_v3  ;;  %v791_v9 = vpack.c.bf16 %v788_v7, %v787_v6  ;;  %v2102_v10 = vld [vmem:[%s3377_s27 + $0x20] sm:$0xff]  ;;  %v2103_v11 = vld [vmem:[%s3377_s27 + $0x28] sm:$0xff]  ;;  %v2394_v20 = vld [vmem:[#allocation14 + $0x8] sm:$0xff]   ;;  %vm1074_vm4 = vcmask 254976  }
  0x8e   : > { %2190 = vmatprep.subr.bf16.mxu0 %v792_v4  ;;  %v909_v13 = vpack.c.bf16 %v2103_v11, %v2102_v10  ;;  %v2389_v14 = vld [vmem:[%s3378_s2] sm:$0xff]   ;;  %v2391_v16 = vld [vmem:[%s3378_s2 + $0x8] sm:$0xff]   ;;  %v2100_v24 = vld [vmem:[%s3379_s10 + $0x10] sm:$0xff]  ;;  %s3381_s5 = smov %s3380_s29 }
  0x8f   : > { %2198 = vmatprep.subr.bf16.mxu1 %v910_v8  ;;  %2191 = vmatpush3.bf16.msra.mxu0 %v792_v4  ;;  %v2390_v15 = vld [vmem:[%s3378_s2] sm:$0xff]   ;;  %v2392_v17 = vld [vmem:[%s3378_s2 + $0x8] sm:$0xff]   ;;  %v2101_v25 = vld [vmem:[%s3379_s10 + $0x18] sm:$0xff]  ;;  %v890_v28 = vsel %vm771_vm0, %v2100_v24, 0.0 }
  0x90   : > { %2199 = vmatpush3.bf16.msra.mxu1 %v910_v8  ;;  %2192 = vmatprep.subr.bf16.mxu0 %v791_v9  ;;  %v2393_v18 = vld [vmem:[%s3314_s17 + $0x8] sm:$0xff]   ;;  %v769_v21 = vld [vmem:[%s3379_s10] sm:$0xff]  ;;  %v891_v29 = vsel %vm771_vm0, %v2101_v25, 0.0  ;;  %v795_v30 = vld [vmem:[%s3380_s29 + $0x10] sm:$0xff] }
  0x91   : > { %2200 = vmatprep.subr.bf16.mxu1 %v909_v13  ;;  %2194 = vmatprep.mubr.msk.bf16.mxu0 %vm771_vm0, %v2389_v14  ;;  %v770_v22 = vld [vmem:[%s3379_s10 + $0x8] sm:$0xff]  ;;  %v772_v23 = vsel %vm771_vm0, %v769_v21, 0.0  ;;  %v2395_v26 = vld [vmem:[%s3314_s17] sm:$0xff]   ;;  %v892_v33 = vadd.f32 %v891_v29, %v890_v28  ;;  %v796_v37 = vld [vmem:[%s3381_s5 + $0x18] sm:$0xff] }
  0x92   : > { %2202 = vmatprep.mubr.msk.bf16.mxu1 %vm771_vm0, %v2390_v15  ;;  %v773_v27 = vsel %vm771_vm0, %v770_v22, 0.0  ;;  %v2396_v31 = vld [vmem:[#allocation14] sm:$0xff]   ;;  %v793_v34 = vld [vmem:[%s3381_s5] sm:$0xff]  ;;  %809 = vperm.xlu1 %2388, %v795_v30  }
  0x93   : > { %2193 = vmatpush3.bf16.msra.mxu0 %v791_v9  ;;  %v774_v32 = vadd.f32 %v773_v27, %v772_v23  ;;  %v893_v36 = vrot.slane %v892_v33, 4  ;;  %799 = vperm.xlu0 %2387, %v793_v34   ;;  %v794_v40 = vld [vmem:[%s3381_s5 + $0x8] sm:$0xff]  ;;  %v2114_v14 = vld [vmem:[%s3317_s20] ss:$0 sm:$0xff] }
  0x94   : > { %2201 = vmatpush3.bf16.msra.mxu1 %v909_v13  ;;  %2206 = vmatprep.subr.bf16.mxu0 %v2683_v19  ;;  %v2110_v13 = vld [vmem:[%s3315_s18] ss:$0 sm:$0xff] }
  0x95   : > { %2214 = vmatprep.subr.bf16.mxu1 %v2683_v19  ;;  %v775_v35 = vrot.slane %v774_v32, 4  ;;  %v894_v39 = vadd.f32 %v893_v36, %v892_v33 }
  0x96   : > { %2195 = vmatmul.mubr.msk.bf16.vlgmr.msra.gmra.mxu0 %vm771_vm0, %v2391_v16  ;;  %814 = vperm.xlu1 %2388, %v796_v37  }
  0x97   : > { %2203 = vmatmul.mubr.msk.bf16.vlgmr.msra.gmra.mxu1 %vm771_vm0, %v2392_v17  ;;  %2207 = vmatpush3.bf16.msra.mxu0 %v2393_v18  ;;  %v776_v38 = vadd.f32 %v775_v35, %v774_v32  ;;  %v895_v42 = vrot.slane %v894_v39, 2 }
  0x98   : > { %2215 = vmatpush3.bf16.msra.mxu1 %v2394_v20  ;;  %2208 = vmatprep.subr.bf16.mxu0 %v2683_v19 }
  0x99   : > { %2216 = vmatprep.subr.bf16.mxu1 %v2683_v19  ;;  %2210 = vmatprep.mubr.msk.bf16.mxu0 %vm2684_vm1, %v2683_v19  ;;  %v777_v41 = vrot.slane %v776_v38, 2  ;;  %v896_v44 = vadd.f32 %v895_v42, %v894_v39 }
  0x9a   : > { %2218 = vmatprep.mubr.msk.bf16.mxu1 %vm2684_vm1, %v2683_v19  ;;  %804 = vperm.xlu0 %2387, %v794_v40  }
  0x9b   : > { %2209 = vmatpush3.bf16.msra.mxu0 %v2395_v26  ;;  %v778_v43 = vadd.f32 %v777_v41, %v776_v38  ;;  %v897_v46 = vrot.slane %v896_v44, 1  ;;  %922 = vperm.xlu1 %2388, %v794_v40  }
  0x9c   : > { %2217 = vmatpush3.bf16.msra.mxu1 %v2396_v31 }
  0x9d   : > { %v779_v45 = vrot.slane %v778_v43, 1  ;;  %v898_v48 = vadd.f32 %v897_v46, %v896_v44 }
  0x9e   : > { %917 = vperm.xlu0 %2387, %v793_v34  }
  0x9f   : > { %v780_v47 = vadd.f32 %v779_v45, %v778_v43  ;;  %v899_v50 = vmul.f32 0.0625, %v898_v48  ;;  %932 = vperm.xlu1 %2388, %v796_v37  }
  0xa1   : > { %v782_v49 = vmul.f32 0.0625, %v780_v47 }
  0xa2   : > { %927 = vperm.xlu0 %2387, %v795_v30  }
  0xa3   : > { %v1006_v51 = vsel %vm1005_vm2, %v782_v49, %v899_v50 }
  0xa4   : > { %v1007_v52 = vpack.c.bf16 %v1006_v51, %v1006_v51 }
  0xa6   : > { %2211 = vmatmul.mubr.msk.bf16.vlgmr.msra.gmra.mxu0 %vm771_vm0, %v1007_v52  ;;  %2219 = vmatmul.mubr.msk.bf16.vlgmr.msra.gmra.mxu1 %vm771_vm0, %v1007_v52 }
 0x10d   : > { %v810_v54 = vpop.permute.xlu1 %809 }
 0x10e   : > { %v800_v53 = vpop.permute.xlu0 %799 }
 0x111   : > { %v815_v56 = vpop.permute.xlu1 %814 }
 0x115   : > { %v805_v55 = vpop.permute.xlu0 %804 }
 0x116   : > { %v923_v58 = vpop.permute.xlu1 %922 }
 0x119   : > { %v918_v57 = vpop.permute.xlu0 %917 }
 0x11a   : > { %v933_v5 = vpop.permute.xlu1 %932 }
 0x11d   : > { %v928_v59 = vpop.permute.xlu0 %927 }
 0x156   : > { %v2196_v60 = vpop.f32.mrf.mxu0 }
 0x157   : > { %v876_v61 = vadd.f32 %v2196_v60, %v810_v54  ;;  %v2204_v62 = vpop.f32.mrf.mxu1 }
 0x158   : > { %v994_v63 = vadd.f32 %v2204_v62, %v928_v59  ;;  %v867_v0 = vpop.f32.mrf.mxu0 }
 0x159   : > { %885 = vst.msk [vmem:[#allocation2 + $0x10] sm:$0xff] %vm882_vm3, %v876_v61  ;;  %v868_v1 = vadd.f32 %v867_v0, %v800_v53  ;;  %v985_v2 = vpop.f32.mrf.mxu1 }
 0x15a   : > { %1003 = vst.msk [vmem:[#allocation2 + $0x30] sm:$0xff] %vm882_vm3, %v994_v63  ;;  %v986_v3 = vadd.f32 %v985_v2, %v918_v57  ;;  %v2197_v4 = vpop.f32.mrf.mxu0 }
 0x15b   : > { %883 = vst.msk [vmem:[#allocation2] sm:$0xff] %vm882_vm3, %v868_v1  ;;  %v879_v6 = vadd.f32 %v2197_v4, %v815_v56  ;;  %v2205_v7 = vpop.f32.mrf.mxu1 }
 0x15c   : > { %1001 = vst.msk [vmem:[#allocation2 + $0x20] sm:$0xff] %vm882_vm3, %v986_v3  ;;  %v997_v8 = vadd.f32 %v2205_v7, %v933_v5  ;;  %v870_v9 = vpop.f32.mrf.mxu0 }
 0x15d   : > { %886 = vst.msk [vmem:[#allocation2 + $0x18] sm:$0xff] %vm882_vm3, %v879_v6  ;;  %v871_v10 = vadd.f32 %v870_v9, %v805_v55  ;;  %v988_v11 = vpop.f32.mrf.mxu1 }
 0x15e   : > { %1004 = vst.msk [vmem:[#allocation2 + $0x38] sm:$0xff] %vm882_vm3, %v997_v8  ;;  %v989_v12 = vadd.f32 %v988_v11, %v923_v58 }
 0x15f   : > { %884 = vst.msk [vmem:[#allocation2 + $0x8] sm:$0xff] %vm882_vm3, %v871_v10 }
 0x160   : > { %1002 = vst.msk [vmem:[#allocation2 + $0x28] sm:$0xff] %vm882_vm3, %v989_v12 }
 0x166   : > { %v1068_v15 = vpop.f32.mrf.mxu0  ;;  %v1133_v16 = vpop.f32.mrf.mxu1 }
 0x167   : > { %v1069_v17 = vadd.f32 %v2110_v13, %v1068_v15  ;;  %v1134_v18 = vadd.f32 %v2114_v14, %v1133_v16 }
 0x168   : > { %v2212_v19 = vpop.f32.mrf.mxu0  ;;  %v2220_v20 = vpop.f32.mrf.mxu1 }
 0x169   : > { %1075 = vst.msk [vmem:[#allocation3] sm:$0x3] %vm1074_vm4, %v1069_v17  ;;  %1139 = vst.msk [vmem:[#allocation4] sm:$0x3] %vm1074_vm4, %v1134_v18 }
 0x16a   : > { %v1071_v21 = vpop.f32.mrf.mxu0  ;;  %v1136_v22 = vpop.f32.mrf.mxu1 }
 0x16c   : > { %v2213_v23 = vpop.f32.mrf.mxu0  ;;  %v2221_v24 = vpop.f32.mrf.mxu1 }
 0x16d PF: > { %vm1157_vm5 = vcmask 261120   ;;  %s3382_s28 = sld [smem:[#allocation35_spill]]  ;;  %v2685_v31 = vmov 0   ;;  %v2686_v34 = vmov 1   ;;  %v1290_v40 = vld [vmem:[#allocation5] sm:$0x1] }
 0x16e   : > { %s3383_s7 = sld [smem:[#allocation36_spill]]  ;;  %2398 = vset.pattern.permute.xlu1 %v2685_v31  ;;  %2397 = vset.pattern.permute.xlu0 %v2685_v31  ;;  %v1216_v48 = vld [vmem:[#allocation2] sm:$0xff]  ;;  %v1389_v49 = vld [vmem:[#allocation2 + $0x28] sm:$0xff]  ;;  %v1218_v51 = vld [vmem:[#allocation2 + $0x10] sm:$0xff]  ;;  %vm1276_vm6 = vcmask 130048   ;;  %vm2688_vm7 = vmmov 0  }
 0x16f   : > { %v1388_v50 = vld [vmem:[#allocation2 + $0x20] sm:$0xff]  ;;  %v1390_v53 = vld [vmem:[#allocation2 + $0x30] sm:$0xff]  ;;  %v1219_v61 = vld [vmem:[#allocation2 + $0x18] sm:$0xff]  ;;  %s3384_s6 = sld [smem:[#allocation30_spill]]  ;;  %vm1521_vm8 = vcmask 1040384   ;;  %s2689_s3 = smov 32  }
 0x170   : > { %v1140_v25 = vld [vmem:[#allocation3] sm:$0x3]  ;;  %v1217_v63 = vld [vmem:[#allocation2 + $0x8] sm:$0xff]  ;;  %v1391_v10 = vld [vmem:[#allocation2 + $0x38] sm:$0xff]  ;;  %s2690_s8 = smov 64   ;;  %s3385_s4 = sld [smem:[#allocation29_spill]] }
 0x171   : > { %v3085_v27 = vpack.c.bf16 %v1140_v25, %v1140_v25  ;;  %s2691_s29 = smov 96   ;;  %vm1904_vm10 = vcmask 123904   ;;  %vm1815_vm12 = vcmask 254976   ;;  %p3386_p10 = scmp.ne.s32.totalorder %s3365_s26, 0 }
 0x172   : > { %s2692_s25 = smov [#allocation16]  }
 0x173   : > { %v2407_v26 = vld [vmem:[%s3382_s28] sm:$0xff]   ;;  %2282 = vmatprep.subr.msk.bf16.mxu0 %vm1157_vm5, %v3085_v27  ;;  %v1165_v30 = vsel %vm1157_vm5, %v3085_v27, 0  ;;  %v2408_v33 = vld [vmem:[%s3382_s28 + $0x8] sm:$0xff]  }
 0x174   : > { %2224 = vmatprep.mubr.msk.bf16.mxu0 %vm1157_vm5, %v2407_v26  ;;  %v1249_v28 = vld [vmem:[%s3383_s7 + $0x8] sm:$0xff]  ;;  %v1248_v29 = vld [vmem:[%s3383_s7] sm:$0xff]  ;;  %v1250_v32 = vld [vmem:[%s3383_s7 + $0x10] sm:$0xff]  ;;  %2223 = vmatpush3.bf16.xpose.msra.mxu0 %v1165_v30 }
 0x175   : > { %1259 = vperm.xlu1 %2398, %v1249_v28   ;;  %1254 = vperm.xlu0 %2397, %v1248_v29   ;;  %v1251_v39 = vld [vmem:[%s3383_s7 + $0x18] sm:$0xff] }
 0x179   : > { %1264 = vperm.xlu1 %2398, %v1250_v32   ;;  %2399 = vset.pattern.permute.xlu0 %v2686_v34 }
 0x17b   : > { %2225 = vmatmul.mubr.msk.bf16.vlgmr.msra.gmra.mxu0 %vm1157_vm5, %v2408_v33 }
 0x1f0   : > { %v1260_v41 = vpop.permute.xlu1 %1259  ;;  %v1255_v42 = vpop.permute.xlu0 %1254 }
 0x1f4   : > { %v1265_v43 = vpop.permute.xlu1 %1264 }
 0x23b   : > { %v2226_v35 = vpop.f32.mrf.mxu0 }
 0x23c   : > { %1401 = vperm.xlu0 %2399, %v2226_v35   ;;  %1232 = vperm.xlu1 %2398, %v2226_v35  }
 0x23d   : > { %v1201_v36 = vpop.f32.mrf.mxu0 }
 0x23f   : > { %v2227_v37 = vpop.f32.mrf.mxu0 }
 0x240   : > { %2400 = vset.pattern.permute.xlu0 %v2685_v31  ;;  %1237 = vperm.xlu1 %2398, %v2227_v37  }
 0x241   : > { %1222 = vperm.xlu0 %2400, %v1201_v36   ;;  %v1204_v38 = vpop.f32.mrf.mxu0 }
 0x244   : > { %2403 = vset.pattern.permute.xlu1 %v2686_v34 }
 0x245   : > { %2401 = vset.pattern.permute.xlu0 %v2686_v34  ;;  %1397 = vperm.xlu1 %2403, %v1204_v38  }
 0x246   : > { %1393 = vperm.xlu0 %2401, %v1201_v36   ;;  %v1296_v36 = vlaneseq }
 0x249   : > { %2404 = vset.pattern.permute.xlu1 %v2685_v31 }
 0x24a   : > { %2402 = vset.pattern.permute.xlu0 %v2685_v31  ;;  %1269 = vperm.xlu1 %2404, %v1251_v39  }
 0x24b   : > { %1227 = vperm.xlu0 %2402, %v1204_v38  }
 0x24e   : > { %1293 = vperm.xlu1 %2404, %v1290_v40   ;;  %v1297_v40 = vshrl.u32 %v1296_v36, 7 }
 0x24f   : > { %2405 = vset.pattern.permute.xlu0 %v2686_v34 }
 0x250   : > { %1405 = vperm.xlu0 %2405, %v2227_v37  }
 0x254   : > { %2406 = vset.pattern.permute.xlu0 %v2685_v31 }
 0x2b7   : > { %v1402_v44 = vpop.permute.xlu0 %1401  ;;  %v1233_v45 = vpop.permute.xlu1 %1232 }
 0x2b8   : > { %v1242_v58 = vadd.f32 %v1233_v45, %v1218_v51  ;;  %v1410_v60 = vadd.f32 %v1402_v44, %v1390_v53  ;;  %v1298_v45 = vsub.s32 0, %v1297_v40 }
 0x2ba   : > { %v1246_v4 = vmax.f32 %v1242_v58, 0.0  ;;  %v1414_v7 = vmax.f32 %v1410_v60, 0.0  ;;  %v2409_v58 = vld [vmem:[%s3306_s9 + $0x8] sm:$0xff]   ;;  %v2410_v60 = vld [vmem:[%s3306_s9] sm:$0xff]  }
 0x2bb   : > { %v1238_v46 = vpop.permute.xlu1 %1237 }
 0x2bc   : > { %v1223_v47 = vpop.permute.xlu0 %1222  ;;  %v1243_v5 = vadd.f32 %v1238_v46, %v1219_v61  ;;  %v1274_v14 = vmul.f32 %v1265_v43, %v1246_v4  ;;  %v1418_v18 = vmul.f32 %v1414_v7, %v1265_v43  ;;  %v1313_v7 = vld [vmem:[%s3384_s6 + $0x8] sm:$0xff] }
 0x2bd   : > { %v1240_v54 = vadd.f32 %v1223_v47, %v1216_v48 }
 0x2be   : > { %v1247_v15 = vmax.f32 %v1243_v5, 0.0  ;;  %v1280_v26 = vsel %vm1276_vm6, %v1274_v14, 0.0  ;;  %v1423_v28 = vsel %vm1276_vm6, %v1418_v18, 0.0  ;;  %v2123_v18 = vld [vmem:[%s3384_s6 + $0x10] sm:$0xff] }
 0x2bf   : > { %v1244_v0 = vmax.f32 %v1240_v54, 0.0 }
 0x2c0   : > { %v1398_v52 = vpop.permute.xlu1 %1397 }
 0x2c1   : > { %v1409_v55 = vadd.f32 %v1398_v52, %v1389_v49  ;;  %v1394_v56 = vpop.permute.xlu0 %1393  ;;  %v1272_v8 = vmul.f32 %v1255_v42, %v1244_v0 }
 0x2c2   : > { %v1408_v57 = vadd.f32 %v1394_v56, %v1388_v50 }
 0x2c3   : > { %v1413_v59 = vmax.f32 %v1409_v55, 0.0  ;;  %v1277_v20 = vsel %vm1276_vm6, %v1272_v8, 0.0  ;;  %v1312_v8 = vld [vmem:[%s3384_s6] sm:$0xff] }
 0x2c4   : > { %v1412_v62 = vmax.f32 %v1408_v57, 0.0 }
 0x2c5   : > { %v1417_v1 = vmul.f32 %v1413_v59, %v1260_v41  ;;  %v1270_v13 = vpop.permute.xlu1 %1269  ;;  %v2687_v59 = vmov 0.0  }
 0x2c6   : > { %v1416_v2 = vmul.f32 %v1412_v62, %v1255_v42  ;;  %v1228_v3 = vpop.permute.xlu0 %1227  ;;  %v1275_v22 = vmul.f32 %v1270_v13, %v1247_v15  ;;  %2242 = vmatprep.subr.bf16.mxu0 %v2687_v59  ;;  %2246 = vmatprep.mubr.msk.bf16.mxu0 %vm2688_vm7, %v2687_v59 }
 0x2c7   : > { %v1241_v6 = vadd.f32 %v1228_v3, %v1217_v63  ;;  %v1421_v11 = vsel %vm1276_vm6, %v1417_v1, 0.0  ;;  %2243 = vmatpush3.bf16.msra.mxu0 %v2409_v58  ;;  %2228 = vmatprep.subr.mxu1 %v2687_v59 }
 0x2c8   : > { %v1420_v12 = vsel %vm1276_vm6, %v1416_v2, 0.0  ;;  %v1282_v32 = vsel %vm1276_vm6, %v1275_v22, 0.0  ;;  %2244 = vmatprep.subr.bf16.mxu0 %v2687_v59  ;;  %2232 = vmatprep.mubr.msk.f32.mxu1 %vm2688_vm7, %v2687_v59  ;;  %v2411_v22 = vld [vmem:[%s3309_s12 + $0x8] sm:$0xff]  }
 0x2c9   : > { %v1245_v9 = vmax.f32 %v1241_v6, 0.0  ;;  %v1422_v21 = vadd.f32 %v1421_v11, %v1420_v12  ;;  %v1294_v47 = vpop.permute.xlu1 %1293  ;;  %2229 = vmatpush3.msra.mxu1 %v1313_v7 }
 0x2ca   : > { %v1299_v51 = vrot.slane %v1294_v47, %v1298_v45  ;;  %2230 = vmatprep.subr.mxu1 %v2687_v59 }
 0x2cb   : > { %v1273_v16 = vmul.f32 %v1260_v41, %v1245_v9  ;;  %v1406_v17 = vpop.permute.xlu0 %1405  ;;  %v1424_v33 = vadd.f32 %v1423_v28, %v1422_v21  ;;  %2245 = vmatpush3.bf16.msra.mxu0 %v2410_v60  ;;  %2231 = vmatpush3.msra.mxu1 %v1312_v8 }
 0x2cc   : > { %v1411_v19 = vadd.f32 %v1406_v17, %v1391_v10  ;;  %2258 = vmatprep.subr.bf16.mxu0 %v2687_v59  ;;  %2235 = vmatprep.subr.mxu1 %v2687_v59  ;;  %v2124_v17 = vld [vmem:[%s3384_s6 + $0x18] sm:$0xff]  ;;  %s1912_s6 = scalar_lea.sflag [#allocation17], %s2969_s24 }
 0x2cd   : > { %v1278_v23 = vsel %vm1276_vm6, %v1273_v16, 0.0 }
 0x2ce   : > { %v1279_v24 = vadd.f32 %v1278_v23, %v1277_v20  ;;  %v1415_v25 = vmax.f32 %v1411_v19, 0.0  ;;  %2247 = vmatmul.mubr.msk.bf16.vlgmr.msra.gmra.mxu0 %vm1157_vm5, %v3085_v27  ;;  %v2412_v23 = vld [vmem:[%s3308_s11 + $0x8] sm:$0xff]  }
 0x2cf   : > { %2262 = vmatprep.mubr.msk.bf16.mxu0 %vm2688_vm7, %v2687_v59  ;;  %2259 = vmatpush3.bf16.msra.mxu0 %v2412_v23 }
 0x2d0   : > { %v1281_v29 = vadd.f32 %v1280_v26, %v1279_v24  ;;  %v1419_v30 = vmul.f32 %v1415_v25, %v1270_v13  ;;  %2260 = vmatprep.subr.bf16.mxu0 %v2687_v59  ;;  %v2413_v24 = vld [vmem:[%s3309_s12] sm:$0xff]  }
 0x2d1   : > { %v2414_v25 = vld [vmem:[%s3308_s11] sm:$0xff]  }
 0x2d2   : > { %v1283_v34 = vadd.f32 %v1282_v32, %v1281_v29  ;;  %v1425_v35 = vsel %vm1276_vm6, %v1419_v30, 0.0  ;;  %v1597_v26 = vld [vmem:[%s682_s0] sm:$0x3]  ;;  %v1141_v29 = vld [vmem:[#allocation4] sm:$0x3]  ;;  %s1938_s0 = sshll.u32 %s763_s19, 4  ;;  %s1939_s0 = int_to_ptr.vmem [resolvable:$true] %s1938_s0 }
 0x2d3   : > { %v1426_v37 = vadd.f32 %v1425_v35, %v1424_v33  ;;  %2261 = vmatpush3.bf16.msra.mxu0 %v2414_v25  ;;  %v1598_v28 = vpack.c.bf16 %v1597_v26, %v1597_v26  ;;  %v2126_v30 = vld [vmem:[#allocation9] ss:$0 sm:$0xff]  ;;  %s2571_s23 = scalar_lea.vmem %s1939_s0, 32 }
 0x2d4   : > { %v1284_v38 = vrot.slane %v1283_v34, 4  ;;  %2274 = vmatprep.subr.bf16.mxu0 %v2687_v59  ;;  %p2572_p7 = scmp.ne.s32.totalorder %s1939_s0, %s2571_s23 }
 0x2d5   : > { %v1427_v39 = vrot.slane %v1426_v37, 4 }
 0x2d6   : > { %v1285_v41 = vadd.f32 %v1284_v38, %v1283_v34  ;;  %2263 = vmatmul.mubr.msk.bf16.vlgmr.msra.gmra.mxu0 %vm1157_vm5, %v1598_v28  ;;  %p2573_p0 = pnand %p2572_p7, %p3386_p10 }
 0x2d7   : > { %v1428_v42 = vadd.f32 %v1427_v39, %v1426_v37  ;;  %2278 = vmatprep.mubr.msk.bf16.mxu0 %vm2688_vm7, %v2687_v59 }
 0x2d8   : > { %v1286_v43 = vrot.slane %v1285_v41, 2  ;;  %p2574_p12 = pneg %p2573_p0 }
 0x2d9   : > { %v1429_v44 = vrot.slane %v1428_v42, 2 }
 0x2da   : > { %v1287_v46 = vadd.f32 %v1286_v43, %v1285_v41 }
 0x2db   : > { %v1430_v48 = vadd.f32 %v1429_v44, %v1428_v42  ;;  %v2415_v44 = vld [vmem:[%s3310_s13 + $0x8] sm:$0xff]  }
 0x2dc   : > { %v1288_v49 = vrot.slane %v1287_v46, 1 }
 0x2dd   : > { %v1431_v50 = vrot.slane %v1430_v48, 1 }
 0x2de   : > { %v1289_v52 = vadd.f32 %v1288_v49, %v1287_v46  ;;  %v2416_v46 = vld [vmem:[%s3310_s13] sm:$0xff]  }
 0x2df   : > { %v1432_v53 = vadd.f32 %v1431_v50, %v1430_v48 }
 0x2e0   : > { %v1300_v54 = vadd.f32 %v1299_v51, %v1289_v52 }
 0x2e1   : > { %v1433_v55 = vadd.f32 %v1432_v53, %v1299_v51 }
 0x2e2   : > { %v1301_v56 = vsel %vm1276_vm6, %v1300_v54, -inf }
 0x2e3   : > { %1302 = vmax.xlane.f32.xlu0 %v1301_v56  ;;  %v1434_v57 = vsel %vm1276_vm6, %v1433_v55, -inf }
 0x2e4   : > { %1435 = vmax.xlane.f32.xlu1 %v1434_v57  ;;  %v2140_v57 = vld [vmem:[#allocation11] ss:$0 sm:$0xff] }
 0x36c   : > { %v1303_v61 = vpop.xlane.xlu0 %1302 }
 0x36d   : > { %v1304_v62 = vsub.f32 %v1300_v54, %v1303_v61  ;;  %v1436_v63 = vpop.xlane.xlu1 %1435 }
 0x36e   : > { %v1437_v0 = vsub.f32 %v1433_v55, %v1436_v63 }
 0x36f   : > { %v1305_v1 = vmul.f32 1.442695, %v1304_v62 }
 0x370   : > { %v1438_v2 = vmul.f32 1.442695, %v1437_v0 }
 0x371   : > { %2419 = vpow2.f32 %v1305_v1 }
 0x372   : > { %2421 = vpow2.f32 %v1438_v2 }
 0x37e   : > { %v2420_v3 = vpop.eup %2419 }
 0x37f   : > { %v1307_v4 = vsel %vm1276_vm6, %v2420_v3, 0.0  ;;  %v2422_v5 = vpop.eup %2421 }
 0x380   : > { %1308 = vadd.xlane.f32.xlu0 %v1307_v4  ;;  %v1440_v6 = vsel %vm1276_vm6, %v2422_v5, 0.0 }
 0x384   : > { %1441 = vadd.xlane.f32.xlu0 %v1440_v6 }
 0x38e   : > { %v1584_v9 = vpop.f32.mrf.mxu0 }
 0x38f   : > { %v1585_v32 = vadd.f32 %v2126_v30, %v1584_v9 }
 0x390   : > { %v2248_v10 = vpop.f32.mrf.mxu0 }
 0x391   : > { %v2130_v33 = vmul.f32 -1.442695, %v1585_v32  ;;  %v1892_v10 = vld [vmem:[%s3385_s4] sm:$0x3] }
 0x392   : > { %v1587_v11 = vpop.f32.mrf.mxu0 }
 0x393   : > { %v1893_v11 = vstv %s2833_s1 }
 0x394   : > { %v2249_v12 = vpop.f32.mrf.mxu0  ;;  %vm1894_vm9 = vcmp.gt.s32.totalorder %v1892_v10, %v1893_v11 }
 0x396   : > { %v1712_v47 = vpop.f32.mrf.mxu0 }
 0x398   : > { %v2264_v48 = vpop.f32.mrf.mxu0 }
 0x39a   : > { %1791 = vrot.lane.b32.xlu0 %v1141_v29, %s2689_s3  ;;  %v1715_v49 = vpop.f32.mrf.mxu0 }
 0x39c   : > { %v2265_v50 = vpop.f32.mrf.mxu0 }
 0x409   : > { %v1309_v13 = vpop.xlane.xlu0 %1308 }
 0x40a   : > { %2423 = vrcp.f32 %v1309_v13  ;;  %v1895_v13 = vsel %vm1894_vm9, 1, %v2685_v31 }
 0x40d   : > { %v1442_v14 = vpop.xlane.xlu0 %1441 }
 0x40e   : > { %2425 = vrcp.f32 %v1442_v14  ;;  %v2417_v14 = vld [vmem:[%s3312_s15 + $0x8] sm:$0xff]  }
 0x40f   : > { %2427 = vpow2.f32 %v2130_v33  ;;  %2275 = vmatpush3.bf16.msra.mxu0 %v2417_v14 }
 0x410   : > { %2276 = vmatprep.subr.bf16.mxu0 %v2687_v59 }
 0x411   : > { %v1792_v6 = vpop.permute.xlu0 %1791 }
 0x417   : > { %v2424_v15 = vpop.eup %2423 }
 0x418   : > { %v1311_v16 = vmul.f32 %v2424_v15, %v2420_v3  ;;  %v2418_v15 = vld [vmem:[%s3312_s15] sm:$0xff]  }
 0x419   : > { %2277 = vmatpush3.bf16.msra.mxu0 %v2418_v15 }
 0x41a   : > { %2233 = vmatmul.mubr.msk.f32.vlgmr.msra.gmra.mxu1 %vm1276_vm6, %v1311_v16 }
 0x41b   : > { %v2426_v19 = vpop.eup %2425  ;;  %2236 = vmatpush3.msra.mxu1 %v2124_v17  ;;  %2239 = vmatprep.mubr.msk.f32.mxu1 %vm2688_vm7, %v2687_v59 }
 0x41c   : > { %2237 = vmatprep.subr.mxu1 %v2687_v59  ;;  %v1444_v20 = vmul.f32 %v2426_v19, %v2422_v5  ;;  %v2428_v34 = vpop.eup %2427 }
 0x41d   : > { %2238 = vmatpush3.msra.mxu1 %v2123_v18  ;;  %v1593_v35 = vadd.f32 1.0, %v2428_v34 }
 0x41e   : > { %2240 = vmatmul.mubr.msk.f32.vlgmr.msra.gmra.mxu1 %vm1276_vm6, %v1444_v20  ;;  %2250 = vmatprep.subr.bf16.mxu1 %v2687_v59  ;;  %v3165_v21 = vsel %vm1521_vm8, %v1311_v16, %v1444_v20 }
 0x41f   : > { %2254 = vmatprep.mubr.msk.bf16.mxu1 %vm2688_vm7, %v2687_v59  ;;  %2251 = vmatpush3.bf16.msra.mxu1 %v2411_v22  ;;  %2429 = vrcp.f32 %v1593_v35 }
 0x420   : > { %2252 = vmatprep.subr.bf16.mxu1 %v2687_v59 }
 0x423   : > { %2253 = vmatpush3.bf16.msra.mxu1 %v2413_v24 }
 0x424   : > { %2266 = vmatprep.subr.bf16.mxu1 %v2687_v59 }
 0x42c   : > { %v2430_v39 = vpop.eup %2429 }
 0x4da   : > { %v1383_v36 = vpop.f32.mrf.mxu1 }
 0x4dc   : > { %v2234_v37 = vpop.f32.mrf.mxu1 }
 0x4de   : > { %v1517_v38 = vpop.f32.mrf.mxu1 }
 0x4df   : > { %v1524_v40 = vrot.slane %v1517_v38, 7 }
 0x4e0   : > { %v2241_v41 = vpop.f32.mrf.mxu1 }
 0x4e1   : > { %v1526_v42 = vsel %vm1521_vm8, %v1383_v36, %v1524_v40 }
 0x4e2   : > { %v1596_v43 = vmul.f32 %v2430_v39, %v1526_v42 }
 0x4e4   : > { %v1603_v45 = vpack.c.bf16 %v1596_v43, %v1596_v43 }
 0x4e6   : > { %2255 = vmatmul.mubr.msk.bf16.vlgmr.msra.gmra.mxu1 %vm1157_vm5, %v1603_v45 }
 0x4e7   : > { %2267 = vmatpush3.bf16.msra.mxu1 %v2415_v44  ;;  %2270 = vmatprep.mubr.msk.bf16.mxu1 %vm2688_vm7, %v2687_v59 }
 0x4e8   : > { %2268 = vmatprep.subr.bf16.mxu1 %v2687_v59 }
 0x4eb   : > { %2269 = vmatpush3.bf16.msra.mxu1 %v2416_v46 }
 0x4ee   : > { %2271 = vmatmul.mubr.msk.bf16.vlgmr.msra.gmra.mxu1 %vm1157_vm5, %v3085_v27 }
 0x5a6   : > { %v1657_v51 = vpop.f32.mrf.mxu1 }
 0x5a7   : > { %v1713_v55 = vadd.f32 %v1712_v47, %v1657_v51 }
 0x5a8   : > { %v2256_v52 = vpop.f32.mrf.mxu1 }
 0x5aa   : > { %v1660_v53 = vpop.f32.mrf.mxu1 }
 0x5ac   : > { %v2257_v54 = vpop.f32.mrf.mxu1 }
 0x5ae   : > { %v1768_v56 = vpop.f32.mrf.mxu1 }
 0x5af   : > { %v1774_v58 = vadd.f32 %v1768_v56, %v1713_v55 }
 0x5b0   : > { %v2272_v60 = vpop.f32.mrf.mxu1 }
 0x5b1   : > { %v1782_v61 = vadd.f32 %v2140_v57, %v1774_v58 }
 0x5b2   : > { %v1771_v62 = vpop.f32.mrf.mxu1 }
 0x5b3   : > { %2431 = vtanh.f32 %v1782_v61  ;;  %v2141_v27 = vmul.f32 -1.442695, %v1782_v61 }
 0x5b4   : > { %v2273_v63 = vpop.f32.mrf.mxu1 }
 0x5b5   : > { %2433 = vpow2.f32 %v2141_v27 }
 0x5c0   : > { %v2432_v0 = vpop.eup %2431 }
 0x5c1   : > { %1796 = vrot.lane.b32.xlu1 %v2432_v0, %s2690_s8 }
 0x5c2   : > { %v2434_v1 = vpop.eup %2433 }
 0x5c3   : > { %v1786_v2 = vadd.f32 1.0, %v2434_v1 }
 0x5c5   : > { %2435 = vrcp.f32 %v1786_v2 }
 0x5d2   : > { %v2436_v3 = vpop.eup %2435 }
 0x5d3   : > { %v1794_v7 = vmul.f32 %v2436_v3, %v1792_v6 }
 0x633   : > { %v1797_v4 = vpop.permute.xlu1 %1796 }
 0x634   : > { %v1799_v5 = vmul.f32 %v2436_v3, %v1797_v4 }
 0x636   : > { %1801 = vrot.lane.b32.xlu1 %v1799_v5, %s2689_s3 }
 0x6a8   : > { %v1802_v8 = vpop.permute.xlu1 %1801 }
 0x6a9   : > { %v1804_v9 = vadd.f32 %v1802_v8, %v1794_v7 }
 0x6ab   : > { %2437 = vtanh.f32 %v1804_v9 }
 0x6b8   : > { %v2438_v12 = vpop.eup %2437 }
 0x6b9   : > { %1807 = vrot.lane.b32.xlu1 %v2438_v12, %s2690_s8  ;;  %s3338_s8 = sshll.u32 %s2833_s1, 5 }
 0x6ba   : > { %s1936_s4 = scalar_lea.hbm %s3319_s22, %s3338_s8 }
 0x6bd   : > { %1897 = vperm.xlu1 %2404, %v1895_v13  }
 0x6c1   : > { %1818 = vrot.lane.b32.xlu1 %v1804_v9, %s2691_s29  ;;  %s2575_s29 = sshll.u32 %s2692_s25, 4  ;;  %s2576_s29 = int_to_ptr.vmem [resolvable:$false] %s2575_s29 }
 0x6c2   : > { %s2577_s2 = scalar_lea.vmem %s2576_s29, 64  ;;  %p2578_p5 = scmp.lt.s32.totalorder %s1939_s0, %s2576_s29 }
 0x6c3   : > { %p2579_p9 = scmp.lt.s32.totalorder %s2577_s2, %s2571_s23 }
 0x6c5   : > { %p2580_p11 = por %p2579_p9, %p2578_p5 }
 0x6c7   : > { %p2581_p13 = pnand %p2580_p11, %p2574_p12 }
 0x72b   : > { %v1808_v16 = vpop.permute.xlu1 %1807 }
 0x72c   : > { %v1810_v17 = vmul.f32 %v2436_v3, %v1808_v16 }
 0x72e   : > { %v1822_v31 = vpack.c.bf16 %v1810_v17, %v1810_v17 }
 0x730   : > { %1835 = vrot.lane.b32.xlu0 %v1822_v31, %s2689_s3 }
 0x734   : > { %1812 = vrot.lane.b32.xlu0 %v1810_v17, %s2689_s3 }
 0x738   : > { %v1898_v18 = vpop.permute.xlu1 %1897 }
 0x739   : > { %vm1899_vm11 = vcmp.eq.s32.totalorder %v1898_v18, 1 }
 0x73a   : > { %v1903_v59 = vsel %vm1899_vm11, %v3165_v21, 0.0 }
 0x73b   : > { %1905 = vst.msk [vmem:[%s763_s19] sm:$0x3] %vm1904_vm10, %v1903_v59 }
 0x73c   : > { %v1819_v19 = vpop.permute.xlu1 %1818 }
 0x73d   : > { %1821 = vst.msk [vmem:[#allocation4] sm:$0x3] %vm1815_vm12, %v1819_v19 }
 0x7a2   : > { %v1836_v20 = vpop.permute.xlu0 %1835 }
 0x7a3   : > { %2279 = vmatmul.mubr.msk.bf16.vlgmr.msra.gmra.mxu0 %vm1157_vm5, %v1836_v20 }
 0x7a6   : > { %v1813_v22 = vpop.permute.xlu0 %1812 }
 0x7a7   : > { %1816 = vst.msk [vmem:[#allocation3] sm:$0x3] %vm1815_vm12, %v1813_v22 }
 0x7a8   : > { %2584 = shalt.err (!%p2581_p13)
}
 0x7a9   : > { %s2585_s3 = scalar_lea.hbm %s1936_s4, 32  ;;  %s2589_s8 = scalar_lea.hbm %s3319_s22, 224 }
 0x7aa   : > { %p2586_p1 = scmp.ne.s32.totalorder %s1936_s4, %s2585_s3  ;;  %p2590_p6 = scmp.lt.s32.totalorder %s1936_s4, %s3319_s22 }
 0x7ab   : > { %p2591_p2 = scmp.lt.s32.totalorder %s2589_s8, %s2585_s3 }
 0x7ac   : > { %p2587_p3 = pnand %p2586_p1, %p3386_p10 }
 0x7ad   : > { %p2592_p8 = por %p2591_p2, %p2590_p6 }
 0x7ae   : > { %p2588_p4 = pneg %p2587_p3 }
 0x7b0   : > { %p2593_p7 = pnand %p2592_p8, %p2588_p4 }
 0x7b2   : > { %2596 = shalt.err (!%p2593_p7)
}
 0x7b3   : > { %2302 = dma.vmem_to_hbm [thread:$0]  (%p3386_p10), %s1939_s0, 32, %s1936_s4, %s1912_s6   ;;  %v2142_v21 = vld [vmem:[#allocation12] ss:$0 sm:$0xff]  ;;  %vm1901_vm13 = vcmask 386048  }
 0x7b4   : > { %s3387_s2 = scalar_lea.vmem [#allocation15], %s2972_s14  ;;  %s3388_s7 = sshll.u32 %s2833_s1, 5 }
 0x7b5   : > { %s1925_s23 = sshll.u32 %s3387_s2, 4  ;;  %s3252_s25 = scalar_lea.hbm %s3318_s21, %s3388_s7  ;;  %s3254_s23 = int_to_ptr.vmem [resolvable:$true] %s1925_s23 }
 0x7b6   : > { %s3389_s4 = smov %s3387_s2  ;;  %s1907_s0 = scalar_lea.sflag [#allocation8], %s2969_s24 }
 0x7b7   : > { %s2597_s6 = scalar_lea.vmem %s3254_s23, 32  ;;  %s2693_s1 = smov [#allocation15]  }
 0x7b8   : > { %p2598_p0 = scmp.ne.s32.totalorder %s3254_s23, %s2597_s6  ;;  %s2601_s29 = sshll.u32 %s2693_s1, 4  ;;  %s2602_s29 = int_to_ptr.vmem [resolvable:$false] %s2601_s29 }
 0x7b9   : > { %s2603_s3 = scalar_lea.vmem %s2602_s29, 64  ;;  %p2604_p9 = scmp.lt.s32.totalorder %s3254_s23, %s2602_s29 }
 0x7ba   : > { %p2599_p12 = pnand %p2598_p0, %p3386_p10  ;;  %p2605_p11 = scmp.lt.s32.totalorder %s2603_s3, %s2597_s6 }
 0x7bc   : > { %p2600_p5 = pneg %p2599_p12  ;;  %p2606_p13 = por %p2605_p11, %p2604_p9 }
 0x7be   : > { %p2607_p1 = pnand %p2606_p13, %p2600_p5 }
 0x863   : > { %v1886_v23 = vpop.f32.mrf.mxu0 }
 0x864   : > { %v1887_v24 = vadd.f32 %v2142_v21, %v1886_v23 }
 0x865   : > { %v2280_v25 = vpop.f32.mrf.mxu0 }
 0x866   : > { %v1900_v26 = vsel %vm1899_vm11, %v1887_v24, 0.0 }
 0x867   : > { %v1889_v28 = vpop.f32.mrf.mxu0  ;;  %1902 = vst.msk [vmem:[%s3389_s4] sm:$0x3] %vm1901_vm13, %v1900_v26 }
 0x868   : > { %2610 = shalt.err (!%p2607_p1)
}
 0x869   : > { %s2611_s14 = scalar_lea.hbm %s3252_s25, 32  ;;  %s2615_s10 = scalar_lea.hbm %s3318_s21, 224 }
 0x86a   : > { %p2612_p3 = scmp.ne.s32.totalorder %s3252_s25, %s2611_s14  ;;  %p2616_p2 = scmp.lt.s32.totalorder %s3252_s25, %s3318_s21 }
 0x86b   : > { %p2617_p8 = scmp.lt.s32.totalorder %s2615_s10, %s2611_s14 }
 0x86c   : > { %p2613_p4 = pnand %p2612_p3, %p3386_p10 }
 0x86d   : > { %p2618_p7 = por %p2617_p8, %p2616_p2 }
 0x86e   : > { %p2614_p6 = pneg %p2613_p4 }
 0x870   : > { %p2619_p0 = pnand %p2618_p7, %p2614_p6 }
 0x872   : > { %2622 = shalt.err (!%p2619_p0)
}
 0x873   : > { %2301 = dma.vmem_to_hbm [thread:$0]  (%p3386_p10), %s3254_s23, 32, %s3252_s25, %s1907_s0   ;;  %v2281_v29 = vpop.f32.mrf.mxu0 }
 0x874 PF: > { %s3390_s5 = sld [smem:[#allocation25_spill]] }
 0x875   : > { %s3391_s8 = sld [smem:[#allocation23_spill]] }
 0x876   : > { %s3392_s4 = sld [smem:[#allocation28_spill]] }
 0x87a   : > { %p2338_p12 = scmp.ge.s32.totalorder %s3390_s5, 2 }
 0x87b   : > { %s1950_s6 = sand.u32 1, %s3391_s8  }
 0x87c   : > { %p3393_p5 = scmp.ne.s32.totalorder %s3392_s4, 0  ;;  %s1951_s1 = scalar_lea.sflag [#allocation8], %s1950_s6 }
 0x87e   : > { %p2323_p9 = pnand %p2338_p12, %p3393_p5 }
 0x880   : > { %p2324_p11 = pneg %p2323_p9 }
 0x882   : > { %2652 = dma.done.wait (%p2324_p11), %s1951_s1, 32  }
 0x883   : > { %2654 = vsyncadd (%p2324_p11), %s1951_s1, 4294967264  ;;  %s1960_s29 = scalar_lea.sflag [#allocation17], %s1950_s6 }
 0x884   : > { %2656 = dma.done.wait (%p2324_p11), %s1960_s29, 32  }
 0x885   : > { %2658 = vsyncadd (%p2324_p11), %s1960_s29, 4294967264  ;;  %s3394_s0 = sld [smem:[#allocation26_spill]]  ;;  %s3397_s29 = smov %s2665_s30 }
 0x886   : > { %s3395_s26 = sld [smem:[#allocation24_spill]] }
 0x887   : > { %s3396_s4 = sld [smem:[#allocation27_spill]] }
 0x88b   : > { %p43_p10 = scmp.ge.s32.totalorder %s3394_s0, 9  }
 0x88c   : > { %s3398_s30 = smov %s3395_s26 }
 0x88d   :  { %45 = sbr.rel (!%p43_p10) target bundleno = 22 (0x16), region = 191 }
 0x892   :  { %1965 = vsyncpa [#allocation7], 1 }
 0x893   :  { %1967 = vsyncpa [#allocation7 + $0x1], 1 }
 0x894   :  { %1968 = vsyncpa [#allocation10], 1 }
 0x895   :  { %1969 = vsyncpa [#allocation13], 1 }
 0x896   :  { %1970 = vsyncpa [#allocation8], 1 }
 0x897   :  { %1972 = vsyncpa [#allocation8 + $0x1], 1 }
 0x898   :  { %1973 = vsyncpa [#allocation17], 1 }
 0x899   :  { %1975 = vsyncpa [#allocation17 + $0x1], 1 }

</bundles_post_ra>
